<compile_context>
chip_gen: v6e
topology: v6e:2x2x1
jax: 0.10.0
libtpu: 0.0.40
codegen_flags: <defaults>
</compile_context>

<pallas_src>
import functools

import jax
import jax.numpy as jnp
from jax import lax
from jax.experimental import pallas as pl
from jax.experimental.pallas import tpu as pltpu

EPS_LN = 1e-5      # LN eps (added to std, like the reference module)
EPS_NORM = 1e-12   # F.normalize(p=2) eps


def _sae_fused_kernel(x_ref, w_enc_t_ref, inv_nrm_ref, w_dec_t_ref,
                      rec_ref, lat_ref, *, topk, d):
    """Fused SAE forward for one block.

    x_ref:       [B, D] f32 input activations
    w_enc_t_ref: [D, H] encoder weight, transposed (MXU operand dtype)
    inv_nrm_ref: [1, H] f32 reciprocal of encoder row L2 norms (folded F.normalize)
    w_dec_t_ref: [H, D] decoder weight, transposed (MXU operand dtype)
    rec_ref:     [B, D] f32 reconstruction output
    lat_ref:     [B, H] f32 pre-activation latents output
    """
    x = x_ref[...]                                                # [B, D] f32

    # ---- LayerNorm (torch semantics: unbiased std, eps added to std) -------
    mu = jnp.mean(x, axis=-1, keepdims=True)                      # [B, 1]
    xc = x - mu
    var = jnp.sum(xc * xc, axis=-1, keepdims=True) / (d - 1)      # unbiased
    std = jnp.sqrt(var)                                           # [B, 1]
    xn = xc * pl.reciprocal(std + EPS_LN)                         # [B, D] (EUP recip)

    # ---- encoder: latents = LN(x) @ normalize(w_enc, dim=-1).T -------------
    # Row-normalization is folded into a per-latent output scale (precomputed
    # once per weight update) instead of re-scaling the whole [H, D] tile.
    mxu_dtype = w_enc_t_ref.dtype
    lat = lax.dot_general(xn.astype(mxu_dtype), w_enc_t_ref[...],
                          (((1,), (0,)), ((), ())),
                          preferred_element_type=jnp.float32)     # [B, H] f32 accum
    lat = lat * inv_nrm_ref[...]
    lat_ref[...] = lat

    # ---- in-kernel k-th-largest threshold: unrolled masked-max loop --------
    # TODO(synk): like `lat >= thr`, this keeps every element tied with the k-th
    # largest value; torch.topk breaks ties by index and keeps exactly k.
    def _step(_, carry):
        work, _thr = carry
        thr = jnp.max(work, axis=-1, keepdims=True)               # [B, 1] lane-max
        work = jnp.where(work >= thr, -jnp.inf, work)
        return work, thr

    init = (lat, jnp.zeros((lat.shape[0], 1), jnp.float32))
    _, thr = lax.fori_loop(0, topk, _step, init, unroll=True)

    masked = jnp.where(lat >= thr, lat, 0.0)                      # [B, H]

    # ---- decoder matmul + LN inversion --------------------------------------
    rec = lax.dot_general(masked.astype(w_dec_t_ref.dtype), w_dec_t_ref[...],
                          (((1,), (0,)), ((), ())),
                          preferred_element_type=jnp.float32)     # [B, D] f32 accum
    rec_ref[...] = rec * std + mu


def prepare_sae_params(w_enc, w_dec, matmul_dtype=jnp.float32):
    """One-time (per weight update) preprocessing, hoisted out of the kernel:
    - fold F.normalize(w_enc, dim=-1) into a [1, H] reciprocal scale,
    - transpose both weights so the in-kernel contraction dim lands on the
      RHS sublane axis (no in-kernel XLU transpose),
    - optionally cast the MXU operands to bf16 (f32 accumulation in-kernel)."""
    w_enc = w_enc.astype(jnp.float32)
    nrm = jnp.sqrt(jnp.sum(w_enc * w_enc, axis=-1, keepdims=True))        # [H, 1]
    inv_nrm = (1.0 / jnp.maximum(nrm, EPS_NORM)).T                        # [1, H] f32
    w_enc_t = jnp.transpose(w_enc).astype(matmul_dtype)                   # [D, H]
    w_dec_t = jnp.transpose(w_dec).astype(matmul_dtype)                   # [H, D]
    return w_enc_t, inv_nrm, w_dec_t


@functools.partial(jax.jit, static_argnames=("topk",))
def sparse_autoencoder_forward(x, w_enc_t, inv_nrm, w_dec_t, *, topk):
    """x: [B, D] f32. Returns (recons [B, D] f32, latents_pre_act [B, H] f32)."""
    B, D = x.shape
    H = w_enc_t.shape[1]
    f32 = jnp.float32

    kernel = functools.partial(_sae_fused_kernel, topk=topk, d=D)
    rec, lat = pl.pallas_call(
        kernel,
        grid=(1,),
        in_specs=[pl.BlockSpec((B, D), lambda i: (0, 0)),
                  pl.BlockSpec((D, H), lambda i: (0, 0)),
                  pl.BlockSpec((1, H), lambda i: (0, 0)),
                  pl.BlockSpec((H, D), lambda i: (0, 0))],
        out_specs=[pl.BlockSpec((B, D), lambda i: (0, 0)),
                   pl.BlockSpec((B, H), lambda i: (0, 0))],
        out_shape=(jax.ShapeDtypeStruct((B, D), f32),
                   jax.ShapeDtypeStruct((B, H), f32)),
        compiler_params=pltpu.CompilerParams(dimension_semantics=("arbitrary",)),
    )(x, w_enc_t, inv_nrm, w_dec_t)
    return rec, lat


# ----------------------------- references ------------------------------------

def _reference_forward(x, w_enc, w_dec, topk):
    """Pure-JAX, all-f32 reference mirroring the PyTorch module literally."""
    mu = jnp.mean(x, axis=-1, keepdims=True)
    xc = x - mu
    std = jnp.sqrt(jnp.sum(xc * xc, axis=-1, keepdims=True) / (x.shape[-1] - 1))
    xn = xc / (std + EPS_LN)
    w = w_enc / jnp.maximum(jnp.linalg.norm(w_enc, axis=-1, keepdims=True), EPS_NORM)
    lat = xn @ w.T
    thr = lax.top_k(lat, topk)[0][:, topk - 1:topk]
    masked = jnp.where(lat >= thr, lat, 0.0)
    rec = masked @ w_dec.T
    return rec * std + mu, lat


def _reference_forward_mm(x, w_enc, w_dec, topk, matmul_dtype):
    """Same math, but with the kernel's matmul precision (low-precision operands,
    f32 accumulation, weight-norm folded into a post-matmul scale)."""
    mu = jnp.mean(x, axis=-1, keepdims=True)
    xc = x - mu
    std = jnp.sqrt(jnp.sum(xc * xc, axis=-1, keepdims=True) / (x.shape[-1] - 1))
    xn = xc / (std + EPS_LN)
    nrm = jnp.sqrt(jnp.sum(w_enc * w_enc, axis=-1, keepdims=True))        # [H, 1]
    inv_nrm = 1.0 / jnp.maximum(nrm, EPS_NORM)
    lat = lax.dot_general(xn.astype(matmul_dtype), w_enc.astype(matmul_dtype),
                          (((1,), (1,)), ((), ())),
                          preferred_element_type=jnp.float32) * inv_nrm.T
    thr = lax.top_k(lat, topk)[0][:, topk - 1:topk]
    masked = jnp.where(lat >= thr, lat, 0.0)
    rec = lax.dot_general(masked.astype(matmul_dtype), w_dec.astype(matmul_dtype),
                          (((1,), (1,)), ((), ())),
                          preferred_element_type=jnp.float32)
    return rec * std + mu, lat


if __name__ == "__main__":
    # Small shapes consistent with the module: txt_dim=128, hidden_dim=512, topk=32, batch=8.
    B, TXT_DIM, HIDDEN_DIM, TOPK = 8, 128, 512, 32

    key = jax.random.PRNGKey(0)
    kx, kw = jax.random.split(key)
    x = jax.random.normal(kx, (B, TXT_DIM), dtype=jnp.float32)

    # nn.Linear(txt_dim, hidden_dim, bias=False): weight [hidden_dim, txt_dim].
    bound = 1.0 / (TXT_DIM ** 0.5)
    w_enc = jax.random.uniform(kw, (HIDDEN_DIM, TXT_DIM), dtype=jnp.float32,
                               minval=-bound, maxval=bound)
    # Untied decoder: weight initialized to encoder weight transposed (pre-normalization copy).
    w_dec = jnp.transpose(w_enc)                                          # [TXT_DIM, HIDDEN_DIM]

    # ---- f32 MXU path: strict check against the PyTorch-faithful reference ----
    params32 = prepare_sae_params(w_enc, w_dec, matmul_dtype=jnp.float32)
    rec32, lat32 = sparse_autoencoder_forward(x, *params32, topk=TOPK)
    jax.block_until_ready((rec32, lat32))
    rec_ref, lat_ref = _reference_forward(x, w_enc, w_dec, TOPK)
    assert rec32.shape == (B, TXT_DIM) and lat32.shape == (B, HIDDEN_DIM)
    assert jnp.allclose(lat32, lat_ref, rtol=2e-3, atol=2e-3)
    assert jnp.allclose(rec32, rec_ref, rtol=2e-3, atol=2e-3)

    # ---- bf16-operand MXU path (perf review): check vs precision-matched ref ----
    params16 = prepare_sae_params(w_enc, w_dec, matmul_dtype=jnp.bfloat16)
    rec16, lat16 = sparse_autoencoder_forward(x, *params16, topk=TOPK)
    jax.block_until_ready((rec16, lat16))
    rec_ref16, lat_ref16 = _reference_forward_mm(x, w_enc, w_dec, TOPK, jnp.bfloat16)
    assert jnp.allclose(lat16, lat_ref16, rtol=2e-3, atol=2e-3)
    assert jnp.allclose(rec16, rec_ref16, rtol=2e-3, atol=2e-3)

    print("KERNEL_OK")
</pallas_src>

<mosaic_0001>
module attributes {stable_mosaic.version = 11 : i64} {
  func.func @_sae_fused_kernel(%arg0: i32, %arg1: memref<8x128xf32, #tpu.memory_space<vmem>>, %arg2: memref<128x512xf32, #tpu.memory_space<vmem>>, %arg3: memref<1x512xf32, #tpu.memory_space<vmem>>, %arg4: memref<512x128xf32, #tpu.memory_space<vmem>>, %arg5: memref<8x128xf32, #tpu.memory_space<vmem>>, %arg6: memref<8x512xf32, #tpu.memory_space<vmem>>) attributes {dimension_semantics = [#tpu.dimension_semantics<arbitrary>], iteration_bounds = array<i64: 1>, scalar_prefetch = 0 : i64, scratch_operands = 0 : i64, tpu.core_type = #tpu.core_type<tc>, window_params = [{pipeline_mode = #tpu.pipeline_mode<synchronous>, transform_indices = @transform_0, window_bounds = array<i64: 8, 128>}, {pipeline_mode = #tpu.pipeline_mode<synchronous>, transform_indices = @transform_1, window_bounds = array<i64: 128, 512>}, {pipeline_mode = #tpu.pipeline_mode<synchronous>, transform_indices = @transform_2, window_bounds = array<i64: 1, 512>}, {pipeline_mode = #tpu.pipeline_mode<synchronous>, transform_indices = @transform_3, window_bounds = array<i64: 512, 128>}, {pipeline_mode = #tpu.pipeline_mode<synchronous>, transform_indices = @transform_4, window_bounds = array<i64: 8, 128>}, {pipeline_mode = #tpu.pipeline_mode<synchronous>, transform_indices = @transform_5, window_bounds = array<i64: 8, 512>}]} {
    %c0 = arith.constant 0 : index
    %c0_0 = arith.constant 0 : index
    %0 = vector.load %arg1[%c0, %c0_0] : memref<8x128xf32, #tpu.memory_space<vmem>>, vector<8x128xf32>
    %cst = arith.constant dense<0.000000e+00> : vector<8xf32>
    %1 = vector.multi_reduction <add>, %0, %cst [1] : vector<8x128xf32> to vector<8xf32>
    %2 = vector.shape_cast %1 : vector<8xf32> to vector<8x1xf32>
    %cst_1 = arith.constant 1.280000e+02 : f32
    %3 = vector.broadcast %cst_1 : f32 to vector<8x1xf32>
    %4 = arith.divf %2, %3 : vector<8x1xf32>
    %5 = vector.broadcast %4 : vector<8x1xf32> to vector<8x128xf32>
    %6 = arith.subf %0, %5 : vector<8x128xf32>
    %7 = arith.mulf %6, %6 : vector<8x128xf32>
    %cst_2 = arith.constant dense<0.000000e+00> : vector<8xf32>
    %8 = vector.multi_reduction <add>, %7, %cst_2 [1] : vector<8x128xf32> to vector<8xf32>
    %9 = vector.shape_cast %8 : vector<8xf32> to vector<8x1xf32>
    %cst_3 = arith.constant 1.270000e+02 : f32
    %10 = vector.broadcast %cst_3 : f32 to vector<8x1xf32>
    %11 = arith.divf %9, %10 : vector<8x1xf32>
    %12 = math.sqrt %11 : vector<8x1xf32>
    %cst_4 = arith.constant 9.99999974E-6 : f32
    %13 = vector.broadcast %cst_4 : f32 to vector<8x1xf32>
    %14 = arith.addf %12, %13 : vector<8x1xf32>
    %15 = tpu.reciprocal %14 : vector<8x1xf32> -> vector<8x1xf32>
    %16 = vector.broadcast %15 : vector<8x1xf32> to vector<8x128xf32>
    %17 = arith.mulf %6, %16 : vector<8x128xf32>
    %c0_5 = arith.constant 0 : index
    %c0_6 = arith.constant 0 : index
    %18 = vector.load %arg2[%c0_5, %c0_6] : memref<128x512xf32, #tpu.memory_space<vmem>>, vector<128x512xf32>
    %cst_7 = arith.constant dense<0.000000e+00> : vector<8x512xf32>
    %19 = tpu.matmul %17, %18, %cst_7 {dimension_numbers = #tpu.dot_dimension_numbers<[1], [0], [0], [1], [0, 0, 1, 1], [], []>} : vector<8x128xf32>, vector<128x512xf32>, vector<8x512xf32> -> vector<8x512xf32>
    %c0_8 = arith.constant 0 : index
    %c0_9 = arith.constant 0 : index
    %20 = vector.load %arg3[%c0_8, %c0_9] : memref<1x512xf32, #tpu.memory_space<vmem>>, vector<1x512xf32>
    %21 = vector.broadcast %20 : vector<1x512xf32> to vector<8x512xf32>
    %22 = arith.mulf %19, %21 : vector<8x512xf32>
    %c0_10 = arith.constant 0 : index
    %c0_11 = arith.constant 0 : index
    %23 = vector.load %arg6[%c0_10, %c0_11] : memref<8x512xf32, #tpu.memory_space<vmem>>, vector<8x512xf32>
    tpu.vector_store %arg6[%c0_10, %c0_11], %22 {strides = array<i32>} : memref<8x512xf32, #tpu.memory_space<vmem>>, vector<8x512xf32>,
    %cst_12 = arith.constant 0.000000e+00 : f32
    %24 = vector.broadcast %cst_12 : f32 to vector<8x1xf32>
    %c0_i32 = arith.constant 0 : i32
    %cst_13 = arith.constant dense<0xFF800000> : vector<8xf32>
    %25 = vector.multi_reduction <maximumf>, %22, %cst_13 [1] : vector<8x512xf32> to vector<8xf32>
    %26 = vector.shape_cast %25 : vector<8xf32> to vector<8x1xf32>
    %27 = vector.broadcast %26 : vector<8x1xf32> to vector<8x512xf32>
    %28 = arith.cmpf oge, %22, %27 : vector<8x512xf32>
    %cst_14 = arith.constant 0xFF800000 : f32
    %29 = vector.broadcast %cst_14 : f32 to vector<8x512xf32>
    %30 = arith.select %28, %29, %22 : vector<8x512xi1>, vector<8x512xf32>
    %c1_i32 = arith.constant 1 : i32
    %cst_15 = arith.constant dense<0xFF800000> : vector<8xf32>
    %31 = vector.multi_reduction <maximumf>, %30, %cst_15 [1] : vector<8x512xf32> to vector<8xf32>
    %32 = vector.shape_cast %31 : vector<8xf32> to vector<8x1xf32>
    %33 = vector.broadcast %32 : vector<8x1xf32> to vector<8x512xf32>
    %34 = arith.cmpf oge, %30, %33 : vector<8x512xf32>
    %cst_16 = arith.constant 0xFF800000 : f32
    %35 = vector.broadcast %cst_16 : f32 to vector<8x512xf32>
    %36 = arith.select %34, %35, %30 : vector<8x512xi1>, vector<8x512xf32>
    %c2_i32 = arith.constant 2 : i32
    %cst_17 = arith.constant dense<0xFF800000> : vector<8xf32>
    %37 = vector.multi_reduction <maximumf>, %36, %cst_17 [1] : vector<8x512xf32> to vector<8xf32>
    %38 = vector.shape_cast %37 : vector<8xf32> to vector<8x1xf32>
    %39 = vector.broadcast %38 : vector<8x1xf32> to vector<8x512xf32>
    %40 = arith.cmpf oge, %36, %39 : vector<8x512xf32>
    %cst_18 = arith.constant 0xFF800000 : f32
    %41 = vector.broadcast %cst_18 : f32 to vector<8x512xf32>
    %42 = arith.select %40, %41, %36 : vector<8x512xi1>, vector<8x512xf32>
    %c3_i32 = arith.constant 3 : i32
    %cst_19 = arith.constant dense<0xFF800000> : vector<8xf32>
    %43 = vector.multi_reduction <maximumf>, %42, %cst_19 [1] : vector<8x512xf32> to vector<8xf32>
    %44 = vector.shape_cast %43 : vector<8xf32> to vector<8x1xf32>
    %45 = vector.broadcast %44 : vector<8x1xf32> to vector<8x512xf32>
    %46 = arith.cmpf oge, %42, %45 : vector<8x512xf32>
    %cst_20 = arith.constant 0xFF800000 : f32
    %47 = vector.broadcast %cst_20 : f32 to vector<8x512xf32>
    %48 = arith.select %46, %47, %42 : vector<8x512xi1>, vector<8x512xf32>
    %c4_i32 = arith.constant 4 : i32
    %cst_21 = arith.constant dense<0xFF800000> : vector<8xf32>
    %49 = vector.multi_reduction <maximumf>, %48, %cst_21 [1] : vector<8x512xf32> to vector<8xf32>
    %50 = vector.shape_cast %49 : vector<8xf32> to vector<8x1xf32>
    %51 = vector.broadcast %50 : vector<8x1xf32> to vector<8x512xf32>
    %52 = arith.cmpf oge, %48, %51 : vector<8x512xf32>
    %cst_22 = arith.constant 0xFF800000 : f32
    %53 = vector.broadcast %cst_22 : f32 to vector<8x512xf32>
    %54 = arith.select %52, %53, %48 : vector<8x512xi1>, vector<8x512xf32>
    %c5_i32 = arith.constant 5 : i32
    %cst_23 = arith.constant dense<0xFF800000> : vector<8xf32>
    %55 = vector.multi_reduction <maximumf>, %54, %cst_23 [1] : vector<8x512xf32> to vector<8xf32>
    %56 = vector.shape_cast %55 : vector<8xf32> to vector<8x1xf32>
    %57 = vector.broadcast %56 : vector<8x1xf32> to vector<8x512xf32>
    %58 = arith.cmpf oge, %54, %57 : vector<8x512xf32>
    %cst_24 = arith.constant 0xFF800000 : f32
    %59 = vector.broadcast %cst_24 : f32 to vector<8x512xf32>
    %60 = arith.select %58, %59, %54 : vector<8x512xi1>, vector<8x512xf32>
    %c6_i32 = arith.constant 6 : i32
    %cst_25 = arith.constant dense<0xFF800000> : vector<8xf32>
    %61 = vector.multi_reduction <maximumf>, %60, %cst_25 [1] : vector<8x512xf32> to vector<8xf32>
    %62 = vector.shape_cast %61 : vector<8xf32> to vector<8x1xf32>
    %63 = vector.broadcast %62 : vector<8x1xf32> to vector<8x512xf32>
    %64 = arith.cmpf oge, %60, %63 : vector<8x512xf32>
    %cst_26 = arith.constant 0xFF800000 : f32
    %65 = vector.broadcast %cst_26 : f32 to vector<8x512xf32>
    %66 = arith.select %64, %65, %60 : vector<8x512xi1>, vector<8x512xf32>
    %c7_i32 = arith.constant 7 : i32
    %cst_27 = arith.constant dense<0xFF800000> : vector<8xf32>
    %67 = vector.multi_reduction <maximumf>, %66, %cst_27 [1] : vector<8x512xf32> to vector<8xf32>
    %68 = vector.shape_cast %67 : vector<8xf32> to vector<8x1xf32>
    %69 = vector.broadcast %68 : vector<8x1xf32> to vector<8x512xf32>
    %70 = arith.cmpf oge, %66, %69 : vector<8x512xf32>
    %cst_28 = arith.constant 0xFF800000 : f32
    %71 = vector.broadcast %cst_28 : f32 to vector<8x512xf32>
    %72 = arith.select %70, %71, %66 : vector<8x512xi1>, vector<8x512xf32>
    %c8_i32 = arith.constant 8 : i32
    %cst_29 = arith.constant dense<0xFF800000> : vector<8xf32>
    %73 = vector.multi_reduction <maximumf>, %72, %cst_29 [1] : vector<8x512xf32> to vector<8xf32>
    %74 = vector.shape_cast %73 : vector<8xf32> to vector<8x1xf32>
    %75 = vector.broadcast %74 : vector<8x1xf32> to vector<8x512xf32>
    %76 = arith.cmpf oge, %72, %75 : vector<8x512xf32>
    %cst_30 = arith.constant 0xFF800000 : f32
    %77 = vector.broadcast %cst_30 : f32 to vector<8x512xf32>
    %78 = arith.select %76, %77, %72 : vector<8x512xi1>, vector<8x512xf32>
    %c9_i32 = arith.constant 9 : i32
    %cst_31 = arith.constant dense<0xFF800000> : vector<8xf32>
    %79 = vector.multi_reduction <maximumf>, %78, %cst_31 [1] : vector<8x512xf32> to vector<8xf32>
    %80 = vector.shape_cast %79 : vector<8xf32> to vector<8x1xf32>
    %81 = vector.broadcast %80 : vector<8x1xf32> to vector<8x512xf32>
    %82 = arith.cmpf oge, %78, %81 : vector<8x512xf32>
    %cst_32 = arith.constant 0xFF800000 : f32
    %83 = vector.broadcast %cst_32 : f32 to vector<8x512xf32>
    %84 = arith.select %82, %83, %78 : vector<8x512xi1>, vector<8x512xf32>
    %c10_i32 = arith.constant 10 : i32
    %cst_33 = arith.constant dense<0xFF800000> : vector<8xf32>
    %85 = vector.multi_reduction <maximumf>, %84, %cst_33 [1] : vector<8x512xf32> to vector<8xf32>
    %86 = vector.shape_cast %85 : vector<8xf32> to vector<8x1xf32>
    %87 = vector.broadcast %86 : vector<8x1xf32> to vector<8x512xf32>
    %88 = arith.cmpf oge, %84, %87 : vector<8x512xf32>
    %cst_34 = arith.constant 0xFF800000 : f32
    %89 = vector.broadcast %cst_34 : f32 to vector<8x512xf32>
    %90 = arith.select %88, %89, %84 : vector<8x512xi1>, vector<8x512xf32>
    %c11_i32 = arith.constant 11 : i32
    %cst_35 = arith.constant dense<0xFF800000> : vector<8xf32>
    %91 = vector.multi_reduction <maximumf>, %90, %cst_35 [1] : vector<8x512xf32> to vector<8xf32>
    %92 = vector.shape_cast %91 : vector<8xf32> to vector<8x1xf32>
    %93 = vector.broadcast %92 : vector<8x1xf32> to vector<8x512xf32>
    %94 = arith.cmpf oge, %90, %93 : vector<8x512xf32>
    %cst_36 = arith.constant 0xFF800000 : f32
    %95 = vector.broadcast %cst_36 : f32 to vector<8x512xf32>
    %96 = arith.select %94, %95, %90 : vector<8x512xi1>, vector<8x512xf32>
    %c12_i32 = arith.constant 12 : i32
    %cst_37 = arith.constant dense<0xFF800000> : vector<8xf32>
    %97 = vector.multi_reduction <maximumf>, %96, %cst_37 [1] : vector<8x512xf32> to vector<8xf32>
    %98 = vector.shape_cast %97 : vector<8xf32> to vector<8x1xf32>
    %99 = vector.broadcast %98 : vector<8x1xf32> to vector<8x512xf32>
    %100 = arith.cmpf oge, %96, %99 : vector<8x512xf32>
    %cst_38 = arith.constant 0xFF800000 : f32
    %101 = vector.broadcast %cst_38 : f32 to vector<8x512xf32>
    %102 = arith.select %100, %101, %96 : vector<8x512xi1>, vector<8x512xf32>
    %c13_i32 = arith.constant 13 : i32
    %cst_39 = arith.constant dense<0xFF800000> : vector<8xf32>
    %103 = vector.multi_reduction <maximumf>, %102, %cst_39 [1] : vector<8x512xf32> to vector<8xf32>
    %104 = vector.shape_cast %103 : vector<8xf32> to vector<8x1xf32>
    %105 = vector.broadcast %104 : vector<8x1xf32> to vector<8x512xf32>
    %106 = arith.cmpf oge, %102, %105 : vector<8x512xf32>
    %cst_40 = arith.constant 0xFF800000 : f32
    %107 = vector.broadcast %cst_40 : f32 to vector<8x512xf32>
    %108 = arith.select %106, %107, %102 : vector<8x512xi1>, vector<8x512xf32>
    %c14_i32 = arith.constant 14 : i32
    %cst_41 = arith.constant dense<0xFF800000> : vector<8xf32>
    %109 = vector.multi_reduction <maximumf>, %108, %cst_41 [1] : vector<8x512xf32> to vector<8xf32>
    %110 = vector.shape_cast %109 : vector<8xf32> to vector<8x1xf32>
    %111 = vector.broadcast %110 : vector<8x1xf32> to vector<8x512xf32>
    %112 = arith.cmpf oge, %108, %111 : vector<8x512xf32>
    %cst_42 = arith.constant 0xFF800000 : f32
    %113 = vector.broadcast %cst_42 : f32 to vector<8x512xf32>
    %114 = arith.select %112, %113, %108 : vector<8x512xi1>, vector<8x512xf32>
    %c15_i32 = arith.constant 15 : i32
    %cst_43 = arith.constant dense<0xFF800000> : vector<8xf32>
    %115 = vector.multi_reduction <maximumf>, %114, %cst_43 [1] : vector<8x512xf32> to vector<8xf32>
    %116 = vector.shape_cast %115 : vector<8xf32> to vector<8x1xf32>
    %117 = vector.broadcast %116 : vector<8x1xf32> to vector<8x512xf32>
    %118 = arith.cmpf oge, %114, %117 : vector<8x512xf32>
    %cst_44 = arith.constant 0xFF800000 : f32
    %119 = vector.broadcast %cst_44 : f32 to vector<8x512xf32>
    %120 = arith.select %118, %119, %114 : vector<8x512xi1>, vector<8x512xf32>
    %c16_i32 = arith.constant 16 : i32
    %cst_45 = arith.constant dense<0xFF800000> : vector<8xf32>
    %121 = vector.multi_reduction <maximumf>, %120, %cst_45 [1] : vector<8x512xf32> to vector<8xf32>
    %122 = vector.shape_cast %121 : vector<8xf32> to vector<8x1xf32>
    %123 = vector.broadcast %122 : vector<8x1xf32> to vector<8x512xf32>
    %124 = arith.cmpf oge, %120, %123 : vector<8x512xf32>
    %cst_46 = arith.constant 0xFF800000 : f32
    %125 = vector.broadcast %cst_46 : f32 to vector<8x512xf32>
    %126 = arith.select %124, %125, %120 : vector<8x512xi1>, vector<8x512xf32>
    %c17_i32 = arith.constant 17 : i32
    %cst_47 = arith.constant dense<0xFF800000> : vector<8xf32>
    %127 = vector.multi_reduction <maximumf>, %126, %cst_47 [1] : vector<8x512xf32> to vector<8xf32>
    %128 = vector.shape_cast %127 : vector<8xf32> to vector<8x1xf32>
    %129 = vector.broadcast %128 : vector<8x1xf32> to vector<8x512xf32>
    %130 = arith.cmpf oge, %126, %129 : vector<8x512xf32>
    %cst_48 = arith.constant 0xFF800000 : f32
    %131 = vector.broadcast %cst_48 : f32 to vector<8x512xf32>
    %132 = arith.select %130, %131, %126 : vector<8x512xi1>, vector<8x512xf32>
    %c18_i32 = arith.constant 18 : i32
    %cst_49 = arith.constant dense<0xFF800000> : vector<8xf32>
    %133 = vector.multi_reduction <maximumf>, %132, %cst_49 [1] : vector<8x512xf32> to vector<8xf32>
    %134 = vector.shape_cast %133 : vector<8xf32> to vector<8x1xf32>
    %135 = vector.broadcast %134 : vector<8x1xf32> to vector<8x512xf32>
    %136 = arith.cmpf oge, %132, %135 : vector<8x512xf32>
    %cst_50 = arith.constant 0xFF800000 : f32
    %137 = vector.broadcast %cst_50 : f32 to vector<8x512xf32>
    %138 = arith.select %136, %137, %132 : vector<8x512xi1>, vector<8x512xf32>
    %c19_i32 = arith.constant 19 : i32
    %cst_51 = arith.constant dense<0xFF800000> : vector<8xf32>
    %139 = vector.multi_reduction <maximumf>, %138, %cst_51 [1] : vector<8x512xf32> to vector<8xf32>
    %140 = vector.shape_cast %139 : vector<8xf32> to vector<8x1xf32>
    %141 = vector.broadcast %140 : vector<8x1xf32> to vector<8x512xf32>
    %142 = arith.cmpf oge, %138, %141 : vector<8x512xf32>
    %cst_52 = arith.constant 0xFF800000 : f32
    %143 = vector.broadcast %cst_52 : f32 to vector<8x512xf32>
    %144 = arith.select %142, %143, %138 : vector<8x512xi1>, vector<8x512xf32>
    %c20_i32 = arith.constant 20 : i32
    %cst_53 = arith.constant dense<0xFF800000> : vector<8xf32>
    %145 = vector.multi_reduction <maximumf>, %144, %cst_53 [1] : vector<8x512xf32> to vector<8xf32>
    %146 = vector.shape_cast %145 : vector<8xf32> to vector<8x1xf32>
    %147 = vector.broadcast %146 : vector<8x1xf32> to vector<8x512xf32>
    %148 = arith.cmpf oge, %144, %147 : vector<8x512xf32>
    %cst_54 = arith.constant 0xFF800000 : f32
    %149 = vector.broadcast %cst_54 : f32 to vector<8x512xf32>
    %150 = arith.select %148, %149, %144 : vector<8x512xi1>, vector<8x512xf32>
    %c21_i32 = arith.constant 21 : i32
    %cst_55 = arith.constant dense<0xFF800000> : vector<8xf32>
    %151 = vector.multi_reduction <maximumf>, %150, %cst_55 [1] : vector<8x512xf32> to vector<8xf32>
    %152 = vector.shape_cast %151 : vector<8xf32> to vector<8x1xf32>
    %153 = vector.broadcast %152 : vector<8x1xf32> to vector<8x512xf32>
    %154 = arith.cmpf oge, %150, %153 : vector<8x512xf32>
    %cst_56 = arith.constant 0xFF800000 : f32
    %155 = vector.broadcast %cst_56 : f32 to vector<8x512xf32>
    %156 = arith.select %154, %155, %150 : vector<8x512xi1>, vector<8x512xf32>
    %c22_i32 = arith.constant 22 : i32
    %cst_57 = arith.constant dense<0xFF800000> : vector<8xf32>
    %157 = vector.multi_reduction <maximumf>, %156, %cst_57 [1] : vector<8x512xf32> to vector<8xf32>
    %158 = vector.shape_cast %157 : vector<8xf32> to vector<8x1xf32>
    %159 = vector.broadcast %158 : vector<8x1xf32> to vector<8x512xf32>
    %160 = arith.cmpf oge, %156, %159 : vector<8x512xf32>
    %cst_58 = arith.constant 0xFF800000 : f32
    %161 = vector.broadcast %cst_58 : f32 to vector<8x512xf32>
    %162 = arith.select %160, %161, %156 : vector<8x512xi1>, vector<8x512xf32>
    %c23_i32 = arith.constant 23 : i32
    %cst_59 = arith.constant dense<0xFF800000> : vector<8xf32>
    %163 = vector.multi_reduction <maximumf>, %162, %cst_59 [1] : vector<8x512xf32> to vector<8xf32>
    %164 = vector.shape_cast %163 : vector<8xf32> to vector<8x1xf32>
    %165 = vector.broadcast %164 : vector<8x1xf32> to vector<8x512xf32>
    %166 = arith.cmpf oge, %162, %165 : vector<8x512xf32>
    %cst_60 = arith.constant 0xFF800000 : f32
    %167 = vector.broadcast %cst_60 : f32 to vector<8x512xf32>
    %168 = arith.select %166, %167, %162 : vector<8x512xi1>, vector<8x512xf32>
    %c24_i32 = arith.constant 24 : i32
    %cst_61 = arith.constant dense<0xFF800000> : vector<8xf32>
    %169 = vector.multi_reduction <maximumf>, %168, %cst_61 [1] : vector<8x512xf32> to vector<8xf32>
    %170 = vector.shape_cast %169 : vector<8xf32> to vector<8x1xf32>
    %171 = vector.broadcast %170 : vector<8x1xf32> to vector<8x512xf32>
    %172 = arith.cmpf oge, %168, %171 : vector<8x512xf32>
    %cst_62 = arith.constant 0xFF800000 : f32
    %173 = vector.broadcast %cst_62 : f32 to vector<8x512xf32>
    %174 = arith.select %172, %173, %168 : vector<8x512xi1>, vector<8x512xf32>
    %c25_i32 = arith.constant 25 : i32
    %cst_63 = arith.constant dense<0xFF800000> : vector<8xf32>
    %175 = vector.multi_reduction <maximumf>, %174, %cst_63 [1] : vector<8x512xf32> to vector<8xf32>
    %176 = vector.shape_cast %175 : vector<8xf32> to vector<8x1xf32>
    %177 = vector.broadcast %176 : vector<8x1xf32> to vector<8x512xf32>
    %178 = arith.cmpf oge, %174, %177 : vector<8x512xf32>
    %cst_64 = arith.constant 0xFF800000 : f32
    %179 = vector.broadcast %cst_64 : f32 to vector<8x512xf32>
    %180 = arith.select %178, %179, %174 : vector<8x512xi1>, vector<8x512xf32>
    %c26_i32 = arith.constant 26 : i32
    %cst_65 = arith.constant dense<0xFF800000> : vector<8xf32>
    %181 = vector.multi_reduction <maximumf>, %180, %cst_65 [1] : vector<8x512xf32> to vector<8xf32>
    %182 = vector.shape_cast %181 : vector<8xf32> to vector<8x1xf32>
    %183 = vector.broadcast %182 : vector<8x1xf32> to vector<8x512xf32>
    %184 = arith.cmpf oge, %180, %183 : vector<8x512xf32>
    %cst_66 = arith.constant 0xFF800000 : f32
    %185 = vector.broadcast %cst_66 : f32 to vector<8x512xf32>
    %186 = arith.select %184, %185, %180 : vector<8x512xi1>, vector<8x512xf32>
    %c27_i32 = arith.constant 27 : i32
    %cst_67 = arith.constant dense<0xFF800000> : vector<8xf32>
    %187 = vector.multi_reduction <maximumf>, %186, %cst_67 [1] : vector<8x512xf32> to vector<8xf32>
    %188 = vector.shape_cast %187 : vector<8xf32> to vector<8x1xf32>
    %189 = vector.broadcast %188 : vector<8x1xf32> to vector<8x512xf32>
    %190 = arith.cmpf oge, %186, %189 : vector<8x512xf32>
    %cst_68 = arith.constant 0xFF800000 : f32
    %191 = vector.broadcast %cst_68 : f32 to vector<8x512xf32>
    %192 = arith.select %190, %191, %186 : vector<8x512xi1>, vector<8x512xf32>
    %c28_i32 = arith.constant 28 : i32
    %cst_69 = arith.constant dense<0xFF800000> : vector<8xf32>
    %193 = vector.multi_reduction <maximumf>, %192, %cst_69 [1] : vector<8x512xf32> to vector<8xf32>
    %194 = vector.shape_cast %193 : vector<8xf32> to vector<8x1xf32>
    %195 = vector.broadcast %194 : vector<8x1xf32> to vector<8x512xf32>
    %196 = arith.cmpf oge, %192, %195 : vector<8x512xf32>
    %cst_70 = arith.constant 0xFF800000 : f32
    %197 = vector.broadcast %cst_70 : f32 to vector<8x512xf32>
    %198 = arith.select %196, %197, %192 : vector<8x512xi1>, vector<8x512xf32>
    %c29_i32 = arith.constant 29 : i32
    %cst_71 = arith.constant dense<0xFF800000> : vector<8xf32>
    %199 = vector.multi_reduction <maximumf>, %198, %cst_71 [1] : vector<8x512xf32> to vector<8xf32>
    %200 = vector.shape_cast %199 : vector<8xf32> to vector<8x1xf32>
    %201 = vector.broadcast %200 : vector<8x1xf32> to vector<8x512xf32>
    %202 = arith.cmpf oge, %198, %201 : vector<8x512xf32>
    %cst_72 = arith.constant 0xFF800000 : f32
    %203 = vector.broadcast %cst_72 : f32 to vector<8x512xf32>
    %204 = arith.select %202, %203, %198 : vector<8x512xi1>, vector<8x512xf32>
    %c30_i32 = arith.constant 30 : i32
    %cst_73 = arith.constant dense<0xFF800000> : vector<8xf32>
    %205 = vector.multi_reduction <maximumf>, %204, %cst_73 [1] : vector<8x512xf32> to vector<8xf32>
    %206 = vector.shape_cast %205 : vector<8xf32> to vector<8x1xf32>
    %207 = vector.broadcast %206 : vector<8x1xf32> to vector<8x512xf32>
    %208 = arith.cmpf oge, %204, %207 : vector<8x512xf32>
    %cst_74 = arith.constant 0xFF800000 : f32
    %209 = vector.broadcast %cst_74 : f32 to vector<8x512xf32>
    %210 = arith.select %208, %209, %204 : vector<8x512xi1>, vector<8x512xf32>
    %c31_i32 = arith.constant 31 : i32
    %cst_75 = arith.constant dense<0xFF800000> : vector<8xf32>
    %211 = vector.multi_reduction <maximumf>, %210, %cst_75 [1] : vector<8x512xf32> to vector<8xf32>
    %212 = vector.shape_cast %211 : vector<8xf32> to vector<8x1xf32>
    %213 = vector.broadcast %212 : vector<8x1xf32> to vector<8x512xf32>
    %214 = arith.cmpf oge, %210, %213 : vector<8x512xf32>
    %cst_76 = arith.constant 0xFF800000 : f32
    %215 = vector.broadcast %cst_76 : f32 to vector<8x512xf32>
    %216 = arith.select %214, %215, %210 : vector<8x512xi1>, vector<8x512xf32>
    %217 = vector.broadcast %212 : vector<8x1xf32> to vector<8x512xf32>
    %218 = arith.cmpf oge, %22, %217 : vector<8x512xf32>
    %cst_77 = arith.constant 0.000000e+00 : f32
    %219 = vector.broadcast %cst_77 : f32 to vector<8x512xf32>
    %220 = arith.select %218, %22, %219 : vector<8x512xi1>, vector<8x512xf32>
    %c0_78 = arith.constant 0 : index
    %c0_79 = arith.constant 0 : index
    %221 = vector.load %arg4[%c0_78, %c0_79] : memref<512x128xf32, #tpu.memory_space<vmem>>, vector<512x128xf32>
    %cst_80 = arith.constant dense<0.000000e+00> : vector<8x128xf32>
    %222 = tpu.matmul %220, %221, %cst_80 {dimension_numbers = #tpu.dot_dimension_numbers<[1], [0], [0], [1], [0, 0, 1, 1], [], []>} : vector<8x512xf32>, vector<512x128xf32>, vector<8x128xf32> -> vector<8x128xf32>
    %223 = vector.broadcast %12 : vector<8x1xf32> to vector<8x128xf32>
    %224 = arith.mulf %222, %223 : vector<8x128xf32>
    %225 = vector.broadcast %4 : vector<8x1xf32> to vector<8x128xf32>
    %226 = arith.addf %224, %225 : vector<8x128xf32>
    %c0_81 = arith.constant 0 : index
    %c0_82 = arith.constant 0 : index
    %227 = vector.load %arg5[%c0_81, %c0_82] : memref<8x128xf32, #tpu.memory_space<vmem>>, vector<8x128xf32>
    tpu.vector_store %arg5[%c0_81, %c0_82], %226 {strides = array<i32>} : memref<8x128xf32, #tpu.memory_space<vmem>>, vector<8x128xf32>,
    return
  }
  func.func @transform_0(%arg0: i32) -> (i32, i32) {
    %c0_i32 = arith.constant 0 : i32
    %c0_i32_0 = arith.constant 0 : i32
    %c0_i32_1 = arith.constant 0 : i32
    return %c0_i32, %c0_i32_0 : i32, i32
  }
  func.func @transform_1(%arg0: i32) -> (i32, i32) {
    %c0_i32 = arith.constant 0 : i32
    %c0_i32_0 = arith.constant 0 : i32
    %c0_i32_1 = arith.constant 0 : i32
    return %c0_i32, %c0_i32_0 : i32, i32
  }
  func.func @transform_2(%arg0: i32) -> (i32, i32) {
    %c0_i32 = arith.constant 0 : i32
    %c0_i32_0 = arith.constant 0 : i32
    %c0_i32_1 = arith.constant 0 : i32
    return %c0_i32, %c0_i32_0 : i32, i32
  }
  func.func @transform_3(%arg0: i32) -> (i32, i32) {
    %c0_i32 = arith.constant 0 : i32
    %c0_i32_0 = arith.constant 0 : i32
    %c0_i32_1 = arith.constant 0 : i32
    return %c0_i32, %c0_i32_0 : i32, i32
  }
  func.func @transform_4(%arg0: i32) -> (i32, i32) {
    %c0_i32 = arith.constant 0 : i32
    %c0_i32_0 = arith.constant 0 : i32
    %c0_i32_1 = arith.constant 0 : i32
    return %c0_i32, %c0_i32_0 : i32, i32
  }
  func.func @transform_5(%arg0: i32) -> (i32, i32) {
    %c0_i32 = arith.constant 0 : i32
    %c0_i32_0 = arith.constant 0 : i32
    %c0_i32_1 = arith.constant 0 : i32
    return %c0_i32, %c0_i32_0 : i32, i32
  }
}

</mosaic_0001>

<bundles_post_ra>
// kernel: sparse_autoencoder_forward.1
= control target key start
LH: loop header
LB: loop body
LE: loop exit
PB: predicated region body
PF: predicated region fallthrough
CT: control target
= control target key end

     0   :  { %11 = vsyncpa [#allocation3], 0  ;;  %s1298_s0 = inlined_call_operand.hbm [shape: f32[8,128], index: 0, kind: input, shape index: {}]   ;;  %s1299_s1 = inlined_call_operand.hbm [shape: f32[128,512], index: 1, kind: input, shape index: {}]   ;;  %s1300_s2 = inlined_call_operand.hbm [shape: f32[1,512], index: 2, kind: input, shape index: {}]   ;;  %s1301_s3 = inlined_call_operand.hbm [shape: f32[512,128], index: 3, kind: input, shape index: {}]   ;;  %s1302_s4 = inlined_call_operand.hbm [shape: f32[8,128], index: 4, kind: output, shape index: {0}]   ;;  %s1303_s5 = inlined_call_operand.hbm [shape: f32[8,512], index: 5, kind: output, shape index: {1}]  }
   0x1   :  { %12 = vsyncpa [#allocation6], 0 }
   0x2   :  { %13 = vsyncpa [#allocation9], 0 }
   0x3   :  { %14 = vsyncpa [#allocation4], 0 }
   0x4   :  { %15 = vsyncpa [#allocation12], 0  ;;  %s1206_s18 = smov [#allocation5]  }
   0x5   :  { %s31_s19 = sshll.u32 %s1206_s18, 4  ;;  %s32_s19 = int_to_ptr.vmem [resolvable:$true] %s31_s19 }
   0x6   :  { %s1084_s20 = scalar_lea.vmem %s32_s19, 8192  ;;  %p1089_p1 = scmp.lt.s32.totalorder %s32_s19, %s32_s19 }
   0x7   :  { %p1085_p0 = scmp.ne.s32.totalorder %s32_s19, %s1084_s20  ;;  %p1090_p2 = scmp.lt.s32.totalorder %s1084_s20, %s1084_s20 }
   0x9   :  { %p1091_p3 = por %p1090_p2, %p1089_p1 }
   0xb   :  { %p1092_p4 = pnand %p1091_p3, %p1085_p0 }
   0xd   :  { %1095 = shalt.err (!%p1092_p4)
}
   0xe   :  { %s1207_s21 = smov 512   ;;  %s1208_s22 = smov 32  }
   0xf   :  { %37 = dma.hbm_to_vmem [thread:$0]  %s1299_s1, 8192, %s32_s19, [#allocation6], %s1207_s21, %s1207_s21, %s1208_s22  }
  0x10   :  { %s1209_s25 = smov [#allocation2]   ;;  %s1210_s27 = smov [#allocation7]  }
  0x11   :  { %s22_s26 = sshll.u32 %s1209_s25, 4  ;;  %s44_s28 = sshll.u32 %s1210_s27, 4  ;;  %s23_s26 = int_to_ptr.vmem [resolvable:$true] %s22_s26  ;;  %s45_s28 = int_to_ptr.vmem [resolvable:$true] %s44_s28 }
  0x12   :  { %s1104_s29 = scalar_lea.vmem %s23_s26, 128  ;;  %p1109_p6 = scmp.lt.s32.totalorder %s23_s26, %s23_s26 }
  0x13   :  { %p1105_p5 = scmp.ne.s32.totalorder %s23_s26, %s1104_s29  ;;  %p1110_p7 = scmp.lt.s32.totalorder %s1104_s29, %s1104_s29 }
  0x15   :  { %p1111_p8 = por %p1110_p7, %p1109_p6 }
  0x17   :  { %p1112_p9 = pnand %p1111_p8, %p1105_p5 }
  0x19   :  { %1115 = shalt.err (!%p1112_p9)
}
  0x1a   :  { %25 = dma.hbm_to_vmem [thread:$0]  %s1298_s0, 128, %s23_s26, [#allocation3]  }
  0x1b   :  { %s1124_s7 = scalar_lea.vmem %s45_s28, 64  ;;  %p1129_p11 = scmp.lt.s32.totalorder %s45_s28, %s45_s28 }
  0x1c   :  { %p1125_p10 = scmp.ne.s32.totalorder %s45_s28, %s1124_s7  ;;  %p1130_p12 = scmp.lt.s32.totalorder %s1124_s7, %s1124_s7 }
  0x1e   :  { %p1131_p13 = por %p1130_p12, %p1129_p11 }
  0x20   :  { %p1132_p0 = pnand %p1131_p13, %p1125_p10 }
  0x22   :  { %1135 = shalt.err (!%p1132_p0)
}
  0x23   :  { %47 = dma.hbm_to_vmem [thread:$0]  %s1300_s2, 64, %s45_s28, [#allocation6]  }
  0x24   :  { %s1211_s9 = smov [#allocation8]  }
  0x25   :  { %s53_s10 = sshll.u32 %s1211_s9, 4  ;;  %s54_s10 = int_to_ptr.vmem [resolvable:$true] %s53_s10 }
  0x26   :  { %s1144_s11 = scalar_lea.vmem %s54_s10, 8192  ;;  %p1149_p2 = scmp.lt.s32.totalorder %s54_s10, %s54_s10 }
  0x27   :  { %p1145_p1 = scmp.ne.s32.totalorder %s54_s10, %s1144_s11  ;;  %p1150_p3 = scmp.lt.s32.totalorder %s1144_s11, %s1144_s11 }
  0x29   :  { %p1151_p4 = por %p1150_p3, %p1149_p2 }
  0x2b   :  { %p1152_p5 = pnand %p1151_p4, %p1145_p1 }
  0x2d   :  { %1155 = shalt.err (!%p1152_p5)
}
  0x2e   :  { %s1212_s0 = smov 128   ;;  %s1213_s12 = smov 8  }
  0x2f   :  { %59 = dma.hbm_to_vmem [thread:$0]  %s1301_s3, 8192, %s54_s10, [#allocation9], %s1212_s0, %s1212_s0, %s1213_s12  }
  0x30   :  { %1196 = dma.done.wait [#allocation3], 128  }
  0x31   :  { %1197 = vsyncadd [#allocation3], 4294967168 }
  0x32   :  { %1198 = dma.done.wait [#allocation6], 8256  }
  0x33   :  { %1199 = vsyncadd [#allocation6], 4294959040 }
  0x34   :  { %1200 = dma.done.wait [#allocation9], 8192  }
  0x35   :  { %1201 = vsyncadd [#allocation9], 4294959104  ;;  %v72_v0 = vld [vmem:[#allocation2] sm:$0xff]  ;;  %v154_v5 = vld [vmem:[#allocation5 + $0x1e8] sm:$0xff]  ;;  %s1215_s2 = smov [#allocation11]  }
  0x36   :  { %73 = vadd.xlane.f32.xlu0 %v72_v0  ;;  %v156_v6 = vld [vmem:[#allocation5 + $0x1f8] sm:$0xff]  ;;  %157 = vmatprep.subr.mxu0 %v154_v5  ;;  %v153_v7 = vld [vmem:[#allocation5 + $0x1e0] sm:$0xff]  ;;  %v155_v8 = vld [vmem:[#allocation5 + $0x1f0] sm:$0xff]  ;;  %s968_s3 = sshll.u32 %s1215_s2, 4  ;;  %s969_s3 = int_to_ptr.vmem [resolvable:$true] %s968_s3 }
  0x37   :  { %228 = vmatprep.subr.mxu1 %v156_v6  ;;  %158 = vmatpush1.msra.mxu0 %v153_v7  ;;  %v150_v9 = vld [vmem:[#allocation5 + $0x1c8] sm:$0xff]  ;;  %v152_v10 = vld [vmem:[#allocation5 + $0x1d8] sm:$0xff]  ;;  %v149_v11 = vld [vmem:[#allocation5 + $0x1c0] sm:$0xff]  ;;  %v1214_v7 = vmov 0.0   ;;  %s1156_s15 = scalar_lea.vmem %s969_s3, 512  ;;  %p1161_p7 = scmp.lt.s32.totalorder %s969_s3, %s969_s3 }
  0x38   :  { %229 = vmatpush1.msra.mxu1 %v155_v8  ;;  %159 = vmatprep.subr.mxu0 %v150_v9  ;;  %v151_v12 = vld [vmem:[#allocation5 + $0x1d0] sm:$0xff]  ;;  %v146_v13 = vld [vmem:[#allocation5 + $0x1a8] sm:$0xff]  ;;  %v148_v14 = vld [vmem:[#allocation5 + $0x1b8] sm:$0xff]  ;;  %p1157_p6 = scmp.ne.s32.totalorder %s969_s3, %s1156_s15  ;;  %p1162_p8 = scmp.lt.s32.totalorder %s1156_s15, %s1156_s15 }
  0x39   :  { %230 = vmatprep.subr.mxu1 %v152_v10  ;;  %160 = vmatpush1.msra.mxu0 %v149_v11  ;;  %v145_v15 = vld [vmem:[#allocation5 + $0x1a0] sm:$0xff]  ;;  %v147_v16 = vld [vmem:[#allocation5 + $0x1b0] sm:$0xff]  ;;  %v142_v17 = vld [vmem:[#allocation5 + $0x188] sm:$0xff] }
  0x3a   :  { %231 = vmatpush1.msra.mxu1 %v151_v12  ;;  %161 = vmatprep.subr.mxu0 %v146_v13  ;;  %v144_v18 = vld [vmem:[#allocation5 + $0x198] sm:$0xff]  ;;  %v141_v19 = vld [vmem:[#allocation5 + $0x180] sm:$0xff]  ;;  %v143_v20 = vld [vmem:[#allocation5 + $0x190] sm:$0xff]  ;;  %p1163_p9 = por %p1162_p8, %p1161_p7 }
  0x3b   :  { %232 = vmatprep.subr.mxu1 %v148_v14  ;;  %162 = vmatpush1.msra.mxu0 %v145_v15  ;;  %v138_v21 = vld [vmem:[#allocation5 + $0x168] sm:$0xff]  ;;  %v140_v22 = vld [vmem:[#allocation5 + $0x178] sm:$0xff]  ;;  %v137_v23 = vld [vmem:[#allocation5 + $0x160] sm:$0xff] }
  0x3c   :  { %233 = vmatpush1.msra.mxu1 %v147_v16  ;;  %163 = vmatprep.subr.mxu0 %v142_v17  ;;  %v139_v24 = vld [vmem:[#allocation5 + $0x170] sm:$0xff]  ;;  %v134_v25 = vld [vmem:[#allocation5 + $0x148] sm:$0xff]  ;;  %v136_v26 = vld [vmem:[#allocation5 + $0x158] sm:$0xff]  ;;  %p1164_p10 = pnand %p1163_p9, %p1157_p6 }
  0x3d   :  { %234 = vmatprep.subr.mxu1 %v144_v18  ;;  %164 = vmatpush1.msra.mxu0 %v141_v19  ;;  %v133_v27 = vld [vmem:[#allocation5 + $0x140] sm:$0xff]  ;;  %v135_v28 = vld [vmem:[#allocation5 + $0x150] sm:$0xff]  ;;  %v130_v29 = vld [vmem:[#allocation5 + $0x128] sm:$0xff]  ;;  %v301_v18 = vlaneseq }
  0x3e   :  { %235 = vmatpush1.msra.mxu1 %v143_v20  ;;  %165 = vmatprep.subr.mxu0 %v138_v21  ;;  %v132_v30 = vld [vmem:[#allocation5 + $0x138] sm:$0xff]  ;;  %v129_v31 = vld [vmem:[#allocation5 + $0x120] sm:$0xff]  ;;  %v131_v32 = vld [vmem:[#allocation5 + $0x130] sm:$0xff] }
  0x3f   :  { %236 = vmatprep.subr.mxu1 %v140_v22  ;;  %166 = vmatpush1.msra.mxu0 %v137_v23  ;;  %v126_v33 = vld [vmem:[#allocation5 + $0x108] sm:$0xff]  ;;  %v128_v34 = vld [vmem:[#allocation5 + $0x118] sm:$0xff]  ;;  %v125_v35 = vld [vmem:[#allocation5 + $0x100] sm:$0xff]  ;;  %v302_v19 = vshrl.u32 %v301_v18, 7 }
  0x40   :  { %237 = vmatpush1.msra.mxu1 %v139_v24  ;;  %167 = vmatprep.subr.mxu0 %v134_v25  ;;  %v127_v36 = vld [vmem:[#allocation5 + $0x110] sm:$0xff]  ;;  %v122_v37 = vld [vmem:[#allocation5 + $0xe8] sm:$0xff]  ;;  %v124_v38 = vld [vmem:[#allocation5 + $0xf8] sm:$0xff] }
  0x41   :  { %238 = vmatprep.subr.mxu1 %v136_v26  ;;  %168 = vmatpush1.msra.mxu0 %v133_v27  ;;  %v121_v39 = vld [vmem:[#allocation5 + $0xe0] sm:$0xff]  ;;  %v123_v40 = vld [vmem:[#allocation5 + $0xf0] sm:$0xff]  ;;  %v118_v41 = vld [vmem:[#allocation5 + $0xc8] sm:$0xff]  ;;  %v303_v20 = vsub.s32 0, %v302_v19  ;;  %v311_v21 = vsub.s32 2, %v302_v19  ;;  %v307_v23 = vsub.s32 1, %v302_v19 }
  0x42   :  { %239 = vmatpush1.msra.mxu1 %v135_v28  ;;  %169 = vmatprep.subr.mxu0 %v130_v29  ;;  %v120_v42 = vld [vmem:[#allocation5 + $0xd8] sm:$0xff]  ;;  %v117_v43 = vld [vmem:[#allocation5 + $0xc0] sm:$0xff]  ;;  %v119_v44 = vld [vmem:[#allocation5 + $0xd0] sm:$0xff]  ;;  %v315_v24 = vsub.s32 3, %v302_v19 }
  0x43   :  { %240 = vmatprep.subr.mxu1 %v132_v30  ;;  %170 = vmatpush1.msra.mxu0 %v129_v31  ;;  %v114_v45 = vld [vmem:[#allocation5 + $0xa8] sm:$0xff]  ;;  %v116_v46 = vld [vmem:[#allocation5 + $0xb8] sm:$0xff]  ;;  %v113_v47 = vld [vmem:[#allocation5 + $0xa0] sm:$0xff] }
  0x44   :  { %241 = vmatpush1.msra.mxu1 %v131_v32  ;;  %171 = vmatprep.subr.mxu0 %v126_v33  ;;  %v115_v48 = vld [vmem:[#allocation5 + $0xb0] sm:$0xff]  ;;  %v110_v49 = vld [vmem:[#allocation5 + $0x88] sm:$0xff]  ;;  %v112_v50 = vld [vmem:[#allocation5 + $0x98] sm:$0xff] }
  0x45   :  { %242 = vmatprep.subr.mxu1 %v128_v34  ;;  %172 = vmatpush1.msra.mxu0 %v125_v35  ;;  %v109_v51 = vld [vmem:[#allocation5 + $0x80] sm:$0xff]  ;;  %v111_v52 = vld [vmem:[#allocation5 + $0x90] sm:$0xff]  ;;  %v106_v53 = vld [vmem:[#allocation5 + $0x68] sm:$0xff] }
  0x46   :  { %243 = vmatpush1.msra.mxu1 %v127_v36  ;;  %173 = vmatprep.subr.mxu0 %v122_v37  ;;  %v108_v54 = vld [vmem:[#allocation5 + $0x78] sm:$0xff]  ;;  %v105_v55 = vld [vmem:[#allocation5 + $0x60] sm:$0xff]  ;;  %v107_v56 = vld [vmem:[#allocation5 + $0x70] sm:$0xff] }
  0x47   :  { %244 = vmatprep.subr.mxu1 %v124_v38  ;;  %174 = vmatpush1.msra.mxu0 %v121_v39  ;;  %v102_v57 = vld [vmem:[#allocation5 + $0x48] sm:$0xff]  ;;  %v104_v58 = vld [vmem:[#allocation5 + $0x58] sm:$0xff]  ;;  %v101_v59 = vld [vmem:[#allocation5 + $0x40] sm:$0xff] }
  0x48   :  { %245 = vmatpush1.msra.mxu1 %v123_v40  ;;  %175 = vmatprep.subr.mxu0 %v118_v41  ;;  %v103_v60 = vld [vmem:[#allocation5 + $0x50] sm:$0xff]  ;;  %v98_v61 = vld [vmem:[#allocation5 + $0x28] sm:$0xff]  ;;  %v100_v62 = vld [vmem:[#allocation5 + $0x38] sm:$0xff] }
  0x49   :  { %246 = vmatprep.subr.mxu1 %v120_v42  ;;  %176 = vmatpush1.msra.mxu0 %v117_v43  ;;  %v97_v63 = vld [vmem:[#allocation5 + $0x20] sm:$0xff]  ;;  %v95_v6 = vld [vmem:[#allocation5 + $0x10] sm:$0xff] }
  0x4a   :  { %247 = vmatpush1.msra.mxu1 %v119_v44  ;;  %177 = vmatprep.subr.mxu0 %v114_v45  ;;  %v93_v5 = vld [vmem:[#allocation5] sm:$0xff] }
  0x4b   :  { %248 = vmatprep.subr.mxu1 %v116_v46  ;;  %178 = vmatpush1.msra.mxu0 %v113_v47  ;;  %v299_v22 = vld [vmem:[#allocation7] sm:$0xf] }
  0x4c   :  { %249 = vmatpush1.msra.mxu1 %v115_v48  ;;  %179 = vmatprep.subr.mxu0 %v110_v49  ;;  %v304_v25 = vrot.slane %v299_v22, %v303_v20  ;;  %v312_v26 = vrot.slane %v299_v22, %v311_v21  ;;  %v308_v27 = vrot.slane %v299_v22, %v307_v23 }
  0x4d   :  { %250 = vmatprep.subr.mxu1 %v112_v50  ;;  %180 = vmatpush1.msra.mxu0 %v109_v51  ;;  %v316_v28 = vrot.slane %v299_v22, %v315_v24 }
  0x4e   :  { %251 = vmatpush1.msra.mxu1 %v111_v52  ;;  %181 = vmatprep.subr.mxu0 %v106_v53 }
  0x4f   :  { %252 = vmatprep.subr.mxu1 %v108_v54  ;;  %182 = vmatpush1.msra.mxu0 %v105_v55 }
  0x50   :  { %253 = vmatpush1.msra.mxu1 %v107_v56  ;;  %183 = vmatprep.subr.mxu0 %v102_v57 }
  0x51   :  { %254 = vmatprep.subr.mxu1 %v104_v58  ;;  %184 = vmatpush1.msra.mxu0 %v101_v59 }
  0x52   :  { %255 = vmatpush1.msra.mxu1 %v103_v60  ;;  %185 = vmatprep.subr.mxu0 %v98_v61 }
  0x53   :  { %256 = vmatprep.subr.mxu1 %v100_v62  ;;  %186 = vmatpush1.msra.mxu0 %v97_v63 }
  0x54   :  { %221 = vmatprep.mubr.f32.mxu0 %v1214_v7  ;;  %292 = vmatprep.mubr.f32.mxu1 %v1214_v7 }
  0xbf   :  { %v74_v1 = vpop.xlane.xlu0 %73 }
  0xc0   :  { %v1259_v2 = vmul.f32 0.0078125, %v74_v1  ;;  %v94_v1 = vld [vmem:[#allocation5 + $0x8] sm:$0xff] }
  0xc1   :  { %187 = vmatprep.subr.mxu0 %v94_v1 }
  0xc2   :  { %v1262_v3 = vsub.f32 %v72_v0, %v1259_v2  ;;  %v99_v0 = vld [vmem:[#allocation5 + $0x30] sm:$0xff]  ;;  %188 = vmatpush1.msra.mxu0 %v93_v5 }
  0xc3   :  { %257 = vmatpush1.msra.mxu1 %v99_v0 }
  0xc4   :  { %v78_v4 = vmul.f32 %v1262_v3, %v1262_v3 }
  0xc6   :  { %79 = vadd.xlane.f32.xlu0 %v78_v4  ;;  %v96_v4 = vld [vmem:[#allocation5 + $0x18] sm:$0xff] }
  0xc7   :  { %258 = vmatprep.subr.mxu1 %v96_v4 }
  0xc8   :  { %259 = vmatpush1.msra.mxu1 %v95_v6 }
 0x14f   :  { %v80_v8 = vpop.xlane.xlu0 %79 }
 0x150   :  { %v82_v9 = vmul.f32 0.007874016, %v80_v8 }
 0x152   :  { %1068 = vrsqrt.f32 %v82_v9  ;;  %vm85_vm0 = vcmp.eq.f32.partialorder %v82_v9, inf  ;;  %v88_v12 = vand.u32 2147483648, %v82_v9  ;;  %vm87_vm1 = vcmp.eq.f32.partialorder %v82_v9, 0.0 }
 0x15f   :  { %v1069_v10 = vpop.eup %1068 }
 0x160   :  { %v84_v11 = vmul.f32 %v1069_v10, %v82_v9 }
 0x162   :  { %v86_v13 = vsel %vm85_vm0, %v82_v9, %v84_v11 }
 0x163   :  { %v1266_v14 = vsel %vm87_vm1, %v88_v12, %v86_v13 }
 0x164   :  { %v90_v15 = vadd.f32 1e-05, %v1266_v14 }
 0x166   :  { %1070 = vrcp.f32 %v90_v15 }
 0x173   :  { %v1071_v16 = vpop.eup %1070 }
 0x174   :  { %v92_v17 = vmul.f32 %v1071_v16, %v1262_v3 }
 0x176   :  { %222 = vmatmul.mubr.f32.vlgmr.msra.gmra.mxu0 %v92_v17  ;;  %293 = vmatmul.mubr.f32.vlgmr.msra.gmra.mxu1 %v92_v17 }
 0x236   :  { %v223_v29 = vpop.f32.mrf.mxu0  ;;  %v294_v30 = vpop.f32.mrf.mxu1 }
 0x237   :  { %v321_v31 = vmul.f32 %v304_v25, %v223_v29  ;;  %v323_v32 = vmul.f32 %v312_v26, %v294_v30 }
 0x238   :  { %v225_v33 = vpop.f32.mrf.mxu0  ;;  %v296_v34 = vpop.f32.mrf.mxu1 }
 0x239   :  { %325 = vst [vmem:[#allocation11] sm:$0xff] %v321_v31  ;;  %327 = vst [vmem:[#allocation11 + $0x10] sm:$0xff] %v323_v32  ;;  %v322_v3 = vmul.f32 %v308_v27, %v225_v33  ;;  %v324_v35 = vmul.f32 %v316_v28, %v296_v34 }
 0x23b   :  { %326 = vst [vmem:[#allocation11 + $0x8] sm:$0xff] %v322_v3  ;;  %328 = vst [vmem:[#allocation11 + $0x18] sm:$0xff] %v324_v35  ;;  %v329_v36 = vmax.f32 %v321_v31, %v322_v3  ;;  %v330_v37 = vmax.f32 %v323_v32, %v324_v35 }
 0x23d   :  { %v331_v38 = vmax.f32 %v329_v36, %v330_v37 }
 0x23f   :  { %332 = vmax.xlane.f32.xlu1 %v331_v38 }
 0x2c8   :  { %v333_v39 = vpop.xlane.xlu1 %332 }
 0x2c9   :  { %vm334_vm2 = vcmp.ge.f32.partialorder %v321_v31, %v333_v39  ;;  %vm335_vm3 = vcmp.ge.f32.partialorder %v322_v3, %v333_v39  ;;  %vm336_vm4 = vcmp.ge.f32.partialorder %v323_v32, %v333_v39  ;;  %vm337_vm5 = vcmp.ge.f32.partialorder %v324_v35, %v333_v39 }
 0x2ca   :  { %v338_v40 = vsel %vm334_vm2, -inf, %v321_v31  ;;  %v339_v41 = vsel %vm335_vm3, -inf, %v322_v3  ;;  %v340_v42 = vsel %vm336_vm4, -inf, %v323_v32  ;;  %v341_v43 = vsel %vm337_vm5, -inf, %v324_v35 }
 0x2cb   :  { %v342_v44 = vmax.f32 %v338_v40, %v339_v41  ;;  %v343_v45 = vmax.f32 %v340_v42, %v341_v43 }
 0x2cd   :  { %v344_v46 = vmax.f32 %v342_v44, %v343_v45 }
 0x2cf   :  { %345 = vmax.xlane.f32.xlu1 %v344_v46 }
 0x358   :  { %v346_v47 = vpop.xlane.xlu1 %345 }
 0x359   :  { %vm347_vm6 = vcmp.ge.f32.partialorder %v338_v40, %v346_v47  ;;  %vm348_vm7 = vcmp.ge.f32.partialorder %v339_v41, %v346_v47  ;;  %vm349_vm8 = vcmp.ge.f32.partialorder %v340_v42, %v346_v47  ;;  %vm350_vm9 = vcmp.ge.f32.partialorder %v341_v43, %v346_v47 }
 0x35a   :  { %v351_v48 = vsel %vm347_vm6, -inf, %v338_v40  ;;  %v352_v49 = vsel %vm348_vm7, -inf, %v339_v41  ;;  %v353_v50 = vsel %vm349_vm8, -inf, %v340_v42  ;;  %v354_v51 = vsel %vm350_vm9, -inf, %v341_v43 }
 0x35b   :  { %v355_v52 = vmax.f32 %v351_v48, %v352_v49  ;;  %v356_v53 = vmax.f32 %v353_v50, %v354_v51 }
 0x35d   :  { %v357_v54 = vmax.f32 %v355_v52, %v356_v53 }
 0x35f   :  { %358 = vmax.xlane.f32.xlu0 %v357_v54 }
 0x3e8   :  { %v359_v55 = vpop.xlane.xlu0 %358 }
 0x3e9   :  { %vm360_vm10 = vcmp.ge.f32.partialorder %v351_v48, %v359_v55  ;;  %vm361_vm11 = vcmp.ge.f32.partialorder %v352_v49, %v359_v55  ;;  %vm362_vm12 = vcmp.ge.f32.partialorder %v353_v50, %v359_v55  ;;  %vm363_vm13 = vcmp.ge.f32.partialorder %v354_v51, %v359_v55 }
 0x3ea   :  { %v364_v56 = vsel %vm360_vm10, -inf, %v351_v48  ;;  %v365_v57 = vsel %vm361_vm11, -inf, %v352_v49  ;;  %v366_v58 = vsel %vm362_vm12, -inf, %v353_v50  ;;  %v367_v59 = vsel %vm363_vm13, -inf, %v354_v51 }
 0x3eb   :  { %v368_v60 = vmax.f32 %v364_v56, %v365_v57  ;;  %v369_v61 = vmax.f32 %v366_v58, %v367_v59 }
 0x3ed   :  { %v370_v62 = vmax.f32 %v368_v60, %v369_v61 }
 0x3ef   :  { %371 = vmax.xlane.f32.xlu1 %v370_v62 }
 0x478   :  { %v372_v63 = vpop.xlane.xlu1 %371 }
 0x479   :  { %vm373_vm14 = vcmp.ge.f32.partialorder %v364_v56, %v372_v63  ;;  %vm374_vm15 = vcmp.ge.f32.partialorder %v365_v57, %v372_v63  ;;  %vm375_vm0 = vcmp.ge.f32.partialorder %v366_v58, %v372_v63  ;;  %vm376_vm1 = vcmp.ge.f32.partialorder %v367_v59, %v372_v63 }
 0x47a   :  { %v377_v0 = vsel %vm373_vm14, -inf, %v364_v56  ;;  %v378_v1 = vsel %vm374_vm15, -inf, %v365_v57  ;;  %v379_v4 = vsel %vm375_vm0, -inf, %v366_v58  ;;  %v380_v5 = vsel %vm376_vm1, -inf, %v367_v59 }
 0x47b   :  { %v381_v6 = vmax.f32 %v377_v0, %v378_v1  ;;  %v382_v7 = vmax.f32 %v379_v4, %v380_v5 }
 0x47d   :  { %v383_v8 = vmax.f32 %v381_v6, %v382_v7 }
 0x47f   :  { %384 = vmax.xlane.f32.xlu0 %v383_v8 }
 0x508   :  { %v385_v9 = vpop.xlane.xlu0 %384 }
 0x509   :  { %vm386_vm2 = vcmp.ge.f32.partialorder %v377_v0, %v385_v9  ;;  %vm387_vm3 = vcmp.ge.f32.partialorder %v378_v1, %v385_v9  ;;  %vm388_vm4 = vcmp.ge.f32.partialorder %v379_v4, %v385_v9  ;;  %vm389_vm5 = vcmp.ge.f32.partialorder %v380_v5, %v385_v9 }
 0x50a   :  { %v390_v10 = vsel %vm386_vm2, -inf, %v377_v0  ;;  %v391_v11 = vsel %vm387_vm3, -inf, %v378_v1  ;;  %v392_v12 = vsel %vm388_vm4, -inf, %v379_v4  ;;  %v393_v13 = vsel %vm389_vm5, -inf, %v380_v5 }
 0x50b   :  { %v394_v15 = vmax.f32 %v390_v10, %v391_v11  ;;  %v395_v16 = vmax.f32 %v392_v12, %v393_v13 }
 0x50d   :  { %v396_v17 = vmax.f32 %v394_v15, %v395_v16 }
 0x50f   :  { %397 = vmax.xlane.f32.xlu1 %v396_v17 }
 0x598   :  { %v398_v18 = vpop.xlane.xlu1 %397 }
 0x599   :  { %vm399_vm6 = vcmp.ge.f32.partialorder %v390_v10, %v398_v18  ;;  %vm400_vm7 = vcmp.ge.f32.partialorder %v391_v11, %v398_v18  ;;  %vm401_vm8 = vcmp.ge.f32.partialorder %v392_v12, %v398_v18  ;;  %vm402_vm9 = vcmp.ge.f32.partialorder %v393_v13, %v398_v18 }
 0x59a   :  { %v403_v19 = vsel %vm399_vm6, -inf, %v390_v10  ;;  %v404_v20 = vsel %vm400_vm7, -inf, %v391_v11  ;;  %v405_v21 = vsel %vm401_vm8, -inf, %v392_v12  ;;  %v406_v22 = vsel %vm402_vm9, -inf, %v393_v13 }
 0x59b   :  { %v407_v23 = vmax.f32 %v403_v19, %v404_v20  ;;  %v408_v24 = vmax.f32 %v405_v21, %v406_v22 }
 0x59d   :  { %v409_v25 = vmax.f32 %v407_v23, %v408_v24 }
 0x59f   :  { %410 = vmax.xlane.f32.xlu0 %v409_v25 }
 0x628   :  { %v411_v26 = vpop.xlane.xlu0 %410 }
 0x629   :  { %vm412_vm10 = vcmp.ge.f32.partialorder %v403_v19, %v411_v26  ;;  %vm413_vm11 = vcmp.ge.f32.partialorder %v404_v20, %v411_v26  ;;  %vm414_vm12 = vcmp.ge.f32.partialorder %v405_v21, %v411_v26  ;;  %vm415_vm13 = vcmp.ge.f32.partialorder %v406_v22, %v411_v26 }
 0x62a   :  { %v416_v27 = vsel %vm412_vm10, -inf, %v403_v19  ;;  %v417_v28 = vsel %vm413_vm11, -inf, %v404_v20  ;;  %v418_v29 = vsel %vm414_vm12, -inf, %v405_v21  ;;  %v419_v30 = vsel %vm415_vm13, -inf, %v406_v22 }
 0x62b   :  { %v420_v31 = vmax.f32 %v416_v27, %v417_v28  ;;  %v421_v32 = vmax.f32 %v418_v29, %v419_v30 }
 0x62d   :  { %v422_v33 = vmax.f32 %v420_v31, %v421_v32 }
 0x62f   :  { %423 = vmax.xlane.f32.xlu1 %v422_v33 }
 0x6b8   :  { %v424_v34 = vpop.xlane.xlu1 %423 }
 0x6b9   :  { %vm425_vm14 = vcmp.ge.f32.partialorder %v416_v27, %v424_v34  ;;  %vm426_vm15 = vcmp.ge.f32.partialorder %v417_v28, %v424_v34  ;;  %vm427_vm0 = vcmp.ge.f32.partialorder %v418_v29, %v424_v34  ;;  %vm428_vm1 = vcmp.ge.f32.partialorder %v419_v30, %v424_v34 }
 0x6ba   :  { %v429_v3 = vsel %vm425_vm14, -inf, %v416_v27  ;;  %v430_v35 = vsel %vm426_vm15, -inf, %v417_v28  ;;  %v431_v36 = vsel %vm427_vm0, -inf, %v418_v29  ;;  %v432_v37 = vsel %vm428_vm1, -inf, %v419_v30 }
 0x6bb   :  { %v433_v38 = vmax.f32 %v429_v3, %v430_v35  ;;  %v434_v39 = vmax.f32 %v431_v36, %v432_v37 }
 0x6bd   :  { %v435_v40 = vmax.f32 %v433_v38, %v434_v39 }
 0x6bf   :  { %436 = vmax.xlane.f32.xlu0 %v435_v40 }
 0x748   :  { %v437_v41 = vpop.xlane.xlu0 %436 }
 0x749   :  { %vm438_vm2 = vcmp.ge.f32.partialorder %v429_v3, %v437_v41  ;;  %vm439_vm3 = vcmp.ge.f32.partialorder %v430_v35, %v437_v41  ;;  %vm440_vm4 = vcmp.ge.f32.partialorder %v431_v36, %v437_v41  ;;  %vm441_vm5 = vcmp.ge.f32.partialorder %v432_v37, %v437_v41 }
 0x74a   :  { %v442_v42 = vsel %vm438_vm2, -inf, %v429_v3  ;;  %v443_v43 = vsel %vm439_vm3, -inf, %v430_v35  ;;  %v444_v44 = vsel %vm440_vm4, -inf, %v431_v36  ;;  %v445_v45 = vsel %vm441_vm5, -inf, %v432_v37 }
 0x74b   :  { %v446_v46 = vmax.f32 %v442_v42, %v443_v43  ;;  %v447_v47 = vmax.f32 %v444_v44, %v445_v45 }
 0x74d   :  { %v448_v48 = vmax.f32 %v446_v46, %v447_v47 }
 0x74f   :  { %449 = vmax.xlane.f32.xlu1 %v448_v48 }
 0x7d8   :  { %v450_v49 = vpop.xlane.xlu1 %449 }
 0x7d9   :  { %vm451_vm6 = vcmp.ge.f32.partialorder %v442_v42, %v450_v49  ;;  %vm452_vm7 = vcmp.ge.f32.partialorder %v443_v43, %v450_v49  ;;  %vm453_vm8 = vcmp.ge.f32.partialorder %v444_v44, %v450_v49  ;;  %vm454_vm9 = vcmp.ge.f32.partialorder %v445_v45, %v450_v49 }
 0x7da   :  { %v455_v50 = vsel %vm451_vm6, -inf, %v442_v42  ;;  %v456_v51 = vsel %vm452_vm7, -inf, %v443_v43  ;;  %v457_v52 = vsel %vm453_vm8, -inf, %v444_v44  ;;  %v458_v53 = vsel %vm454_vm9, -inf, %v445_v45 }
 0x7db   :  { %v459_v54 = vmax.f32 %v455_v50, %v456_v51  ;;  %v460_v55 = vmax.f32 %v457_v52, %v458_v53 }
 0x7dd   :  { %v461_v56 = vmax.f32 %v459_v54, %v460_v55 }
 0x7df   :  { %462 = vmax.xlane.f32.xlu0 %v461_v56 }
 0x868   :  { %v463_v57 = vpop.xlane.xlu0 %462 }
 0x869   :  { %vm464_vm10 = vcmp.ge.f32.partialorder %v455_v50, %v463_v57  ;;  %vm465_vm11 = vcmp.ge.f32.partialorder %v456_v51, %v463_v57  ;;  %vm466_vm12 = vcmp.ge.f32.partialorder %v457_v52, %v463_v57  ;;  %vm467_vm13 = vcmp.ge.f32.partialorder %v458_v53, %v463_v57 }
 0x86a   :  { %v468_v58 = vsel %vm464_vm10, -inf, %v455_v50  ;;  %v469_v59 = vsel %vm465_vm11, -inf, %v456_v51  ;;  %v470_v60 = vsel %vm466_vm12, -inf, %v457_v52  ;;  %v471_v61 = vsel %vm467_vm13, -inf, %v458_v53 }
 0x86b   :  { %v472_v62 = vmax.f32 %v468_v58, %v469_v59  ;;  %v473_v63 = vmax.f32 %v470_v60, %v471_v61 }
 0x86d   :  { %v474_v0 = vmax.f32 %v472_v62, %v473_v63 }
 0x86f   :  { %475 = vmax.xlane.f32.xlu1 %v474_v0 }
 0x8f8   :  { %v476_v1 = vpop.xlane.xlu1 %475 }
 0x8f9   :  { %vm477_vm14 = vcmp.ge.f32.partialorder %v468_v58, %v476_v1  ;;  %vm478_vm15 = vcmp.ge.f32.partialorder %v469_v59, %v476_v1  ;;  %vm479_vm0 = vcmp.ge.f32.partialorder %v470_v60, %v476_v1  ;;  %vm480_vm1 = vcmp.ge.f32.partialorder %v471_v61, %v476_v1 }
 0x8fa   :  { %v481_v4 = vsel %vm477_vm14, -inf, %v468_v58  ;;  %v482_v5 = vsel %vm478_vm15, -inf, %v469_v59  ;;  %v483_v6 = vsel %vm479_vm0, -inf, %v470_v60  ;;  %v484_v7 = vsel %vm480_vm1, -inf, %v471_v61 }
 0x8fb   :  { %v485_v8 = vmax.f32 %v481_v4, %v482_v5  ;;  %v486_v9 = vmax.f32 %v483_v6, %v484_v7 }
 0x8fd   :  { %v487_v10 = vmax.f32 %v485_v8, %v486_v9 }
 0x8ff   :  { %488 = vmax.xlane.f32.xlu0 %v487_v10 }
 0x988   :  { %v489_v11 = vpop.xlane.xlu0 %488 }
 0x989   :  { %vm490_vm2 = vcmp.ge.f32.partialorder %v481_v4, %v489_v11  ;;  %vm491_vm3 = vcmp.ge.f32.partialorder %v482_v5, %v489_v11  ;;  %vm492_vm4 = vcmp.ge.f32.partialorder %v483_v6, %v489_v11  ;;  %vm493_vm5 = vcmp.ge.f32.partialorder %v484_v7, %v489_v11 }
 0x98a   :  { %v494_v12 = vsel %vm490_vm2, -inf, %v481_v4  ;;  %v495_v13 = vsel %vm491_vm3, -inf, %v482_v5  ;;  %v496_v15 = vsel %vm492_vm4, -inf, %v483_v6  ;;  %v497_v16 = vsel %vm493_vm5, -inf, %v484_v7 }
 0x98b   :  { %v498_v17 = vmax.f32 %v494_v12, %v495_v13  ;;  %v499_v18 = vmax.f32 %v496_v15, %v497_v16 }
 0x98d   :  { %v500_v19 = vmax.f32 %v498_v17, %v499_v18 }
 0x98f   :  { %501 = vmax.xlane.f32.xlu1 %v500_v19 }
 0xa18   :  { %v502_v20 = vpop.xlane.xlu1 %501 }
 0xa19   :  { %vm503_vm6 = vcmp.ge.f32.partialorder %v494_v12, %v502_v20  ;;  %vm504_vm7 = vcmp.ge.f32.partialorder %v495_v13, %v502_v20  ;;  %vm505_vm8 = vcmp.ge.f32.partialorder %v496_v15, %v502_v20  ;;  %vm506_vm9 = vcmp.ge.f32.partialorder %v497_v16, %v502_v20 }
 0xa1a   :  { %v507_v21 = vsel %vm503_vm6, -inf, %v494_v12  ;;  %v508_v22 = vsel %vm504_vm7, -inf, %v495_v13  ;;  %v509_v23 = vsel %vm505_vm8, -inf, %v496_v15  ;;  %v510_v24 = vsel %vm506_vm9, -inf, %v497_v16 }
 0xa1b   :  { %v511_v25 = vmax.f32 %v507_v21, %v508_v22  ;;  %v512_v26 = vmax.f32 %v509_v23, %v510_v24 }
 0xa1d   :  { %v513_v27 = vmax.f32 %v511_v25, %v512_v26 }
 0xa1f   :  { %514 = vmax.xlane.f32.xlu0 %v513_v27 }
 0xaa8   :  { %v515_v28 = vpop.xlane.xlu0 %514 }
 0xaa9   :  { %vm516_vm10 = vcmp.ge.f32.partialorder %v507_v21, %v515_v28  ;;  %vm517_vm11 = vcmp.ge.f32.partialorder %v508_v22, %v515_v28  ;;  %vm518_vm12 = vcmp.ge.f32.partialorder %v509_v23, %v515_v28  ;;  %vm519_vm13 = vcmp.ge.f32.partialorder %v510_v24, %v515_v28 }
 0xaaa   :  { %v520_v29 = vsel %vm516_vm10, -inf, %v507_v21  ;;  %v521_v30 = vsel %vm517_vm11, -inf, %v508_v22  ;;  %v522_v31 = vsel %vm518_vm12, -inf, %v509_v23  ;;  %v523_v32 = vsel %vm519_vm13, -inf, %v510_v24 }
 0xaab   :  { %v524_v33 = vmax.f32 %v520_v29, %v521_v30  ;;  %v525_v34 = vmax.f32 %v522_v31, %v523_v32 }
 0xaad   :  { %v526_v3 = vmax.f32 %v524_v33, %v525_v34 }
 0xaaf   :  { %527 = vmax.xlane.f32.xlu1 %v526_v3 }
 0xb38   :  { %v528_v35 = vpop.xlane.xlu1 %527 }
 0xb39   :  { %vm529_vm14 = vcmp.ge.f32.partialorder %v520_v29, %v528_v35  ;;  %vm530_vm15 = vcmp.ge.f32.partialorder %v521_v30, %v528_v35  ;;  %vm531_vm0 = vcmp.ge.f32.partialorder %v522_v31, %v528_v35  ;;  %vm532_vm1 = vcmp.ge.f32.partialorder %v523_v32, %v528_v35 }
 0xb3a   :  { %v533_v36 = vsel %vm529_vm14, -inf, %v520_v29  ;;  %v534_v37 = vsel %vm530_vm15, -inf, %v521_v30  ;;  %v535_v38 = vsel %vm531_vm0, -inf, %v522_v31  ;;  %v536_v39 = vsel %vm532_vm1, -inf, %v523_v32 }
 0xb3b   :  { %v537_v40 = vmax.f32 %v533_v36, %v534_v37  ;;  %v538_v41 = vmax.f32 %v535_v38, %v536_v39 }
 0xb3d   :  { %v539_v42 = vmax.f32 %v537_v40, %v538_v41 }
 0xb3f   :  { %540 = vmax.xlane.f32.xlu0 %v539_v42 }
 0xbc8   :  { %v541_v43 = vpop.xlane.xlu0 %540 }
 0xbc9   :  { %vm542_vm2 = vcmp.ge.f32.partialorder %v533_v36, %v541_v43  ;;  %vm543_vm3 = vcmp.ge.f32.partialorder %v534_v37, %v541_v43  ;;  %vm544_vm4 = vcmp.ge.f32.partialorder %v535_v38, %v541_v43  ;;  %vm545_vm5 = vcmp.ge.f32.partialorder %v536_v39, %v541_v43 }
 0xbca   :  { %v546_v44 = vsel %vm542_vm2, -inf, %v533_v36  ;;  %v547_v45 = vsel %vm543_vm3, -inf, %v534_v37  ;;  %v548_v46 = vsel %vm544_vm4, -inf, %v535_v38  ;;  %v549_v47 = vsel %vm545_vm5, -inf, %v536_v39 }
 0xbcb   :  { %v550_v48 = vmax.f32 %v546_v44, %v547_v45  ;;  %v551_v49 = vmax.f32 %v548_v46, %v549_v47 }
 0xbcd   :  { %v552_v50 = vmax.f32 %v550_v48, %v551_v49 }
 0xbcf   :  { %553 = vmax.xlane.f32.xlu1 %v552_v50 }
 0xc58   :  { %v554_v51 = vpop.xlane.xlu1 %553 }
 0xc59   :  { %vm555_vm6 = vcmp.ge.f32.partialorder %v546_v44, %v554_v51  ;;  %vm556_vm7 = vcmp.ge.f32.partialorder %v547_v45, %v554_v51  ;;  %vm557_vm8 = vcmp.ge.f32.partialorder %v548_v46, %v554_v51  ;;  %vm558_vm9 = vcmp.ge.f32.partialorder %v549_v47, %v554_v51 }
 0xc5a   :  { %v559_v52 = vsel %vm555_vm6, -inf, %v546_v44  ;;  %v560_v53 = vsel %vm556_vm7, -inf, %v547_v45  ;;  %v561_v54 = vsel %vm557_vm8, -inf, %v548_v46  ;;  %v562_v55 = vsel %vm558_vm9, -inf, %v549_v47 }
 0xc5b   :  { %v563_v56 = vmax.f32 %v559_v52, %v560_v53  ;;  %v564_v57 = vmax.f32 %v561_v54, %v562_v55 }
 0xc5d   :  { %v565_v58 = vmax.f32 %v563_v56, %v564_v57 }
 0xc5f   :  { %566 = vmax.xlane.f32.xlu0 %v565_v58 }
 0xce8   :  { %v567_v59 = vpop.xlane.xlu0 %566 }
 0xce9   :  { %vm568_vm10 = vcmp.ge.f32.partialorder %v559_v52, %v567_v59  ;;  %vm569_vm11 = vcmp.ge.f32.partialorder %v560_v53, %v567_v59  ;;  %vm570_vm12 = vcmp.ge.f32.partialorder %v561_v54, %v567_v59  ;;  %vm571_vm13 = vcmp.ge.f32.partialorder %v562_v55, %v567_v59 }
 0xcea   :  { %v572_v60 = vsel %vm568_vm10, -inf, %v559_v52  ;;  %v573_v61 = vsel %vm569_vm11, -inf, %v560_v53  ;;  %v574_v62 = vsel %vm570_vm12, -inf, %v561_v54  ;;  %v575_v63 = vsel %vm571_vm13, -inf, %v562_v55 }
 0xceb   :  { %v576_v0 = vmax.f32 %v572_v60, %v573_v61  ;;  %v577_v1 = vmax.f32 %v574_v62, %v575_v63 }
 0xced   :  { %v578_v4 = vmax.f32 %v576_v0, %v577_v1 }
 0xcef   :  { %579 = vmax.xlane.f32.xlu1 %v578_v4 }
 0xd78   :  { %v580_v5 = vpop.xlane.xlu1 %579 }
 0xd79   :  { %vm581_vm14 = vcmp.ge.f32.partialorder %v572_v60, %v580_v5  ;;  %vm582_vm15 = vcmp.ge.f32.partialorder %v573_v61, %v580_v5  ;;  %vm583_vm0 = vcmp.ge.f32.partialorder %v574_v62, %v580_v5  ;;  %vm584_vm1 = vcmp.ge.f32.partialorder %v575_v63, %v580_v5 }
 0xd7a   :  { %v585_v6 = vsel %vm581_vm14, -inf, %v572_v60  ;;  %v586_v7 = vsel %vm582_vm15, -inf, %v573_v61  ;;  %v587_v8 = vsel %vm583_vm0, -inf, %v574_v62  ;;  %v588_v9 = vsel %vm584_vm1, -inf, %v575_v63 }
 0xd7b   :  { %v589_v10 = vmax.f32 %v585_v6, %v586_v7  ;;  %v590_v11 = vmax.f32 %v587_v8, %v588_v9 }
 0xd7d   :  { %v591_v12 = vmax.f32 %v589_v10, %v590_v11 }
 0xd7f   :  { %592 = vmax.xlane.f32.xlu0 %v591_v12 }
 0xe08   :  { %v593_v13 = vpop.xlane.xlu0 %592 }
 0xe09   :  { %vm594_vm2 = vcmp.ge.f32.partialorder %v585_v6, %v593_v13  ;;  %vm595_vm3 = vcmp.ge.f32.partialorder %v586_v7, %v593_v13  ;;  %vm596_vm4 = vcmp.ge.f32.partialorder %v587_v8, %v593_v13  ;;  %vm597_vm5 = vcmp.ge.f32.partialorder %v588_v9, %v593_v13 }
 0xe0a   :  { %v598_v15 = vsel %vm594_vm2, -inf, %v585_v6  ;;  %v599_v16 = vsel %vm595_vm3, -inf, %v586_v7  ;;  %v600_v17 = vsel %vm596_vm4, -inf, %v587_v8  ;;  %v601_v18 = vsel %vm597_vm5, -inf, %v588_v9 }
 0xe0b   :  { %v602_v19 = vmax.f32 %v598_v15, %v599_v16  ;;  %v603_v20 = vmax.f32 %v600_v17, %v601_v18 }
 0xe0d   :  { %v604_v21 = vmax.f32 %v602_v19, %v603_v20 }
 0xe0f   :  { %605 = vmax.xlane.f32.xlu1 %v604_v21 }
 0xe98   :  { %v606_v22 = vpop.xlane.xlu1 %605 }
 0xe99   :  { %vm607_vm6 = vcmp.ge.f32.partialorder %v598_v15, %v606_v22  ;;  %vm608_vm7 = vcmp.ge.f32.partialorder %v599_v16, %v606_v22  ;;  %vm609_vm8 = vcmp.ge.f32.partialorder %v600_v17, %v606_v22  ;;  %vm610_vm9 = vcmp.ge.f32.partialorder %v601_v18, %v606_v22 }
 0xe9a   :  { %v611_v23 = vsel %vm607_vm6, -inf, %v598_v15  ;;  %v612_v24 = vsel %vm608_vm7, -inf, %v599_v16  ;;  %v613_v25 = vsel %vm609_vm8, -inf, %v600_v17  ;;  %v614_v26 = vsel %vm610_vm9, -inf, %v601_v18 }
 0xe9b   :  { %v615_v27 = vmax.f32 %v611_v23, %v612_v24  ;;  %v616_v28 = vmax.f32 %v613_v25, %v614_v26 }
 0xe9d   :  { %v617_v29 = vmax.f32 %v615_v27, %v616_v28 }
 0xe9f   :  { %618 = vmax.xlane.f32.xlu0 %v617_v29 }
 0xf28   :  { %v619_v30 = vpop.xlane.xlu0 %618 }
 0xf29   :  { %vm620_vm10 = vcmp.ge.f32.partialorder %v611_v23, %v619_v30  ;;  %vm621_vm11 = vcmp.ge.f32.partialorder %v612_v24, %v619_v30  ;;  %vm622_vm12 = vcmp.ge.f32.partialorder %v613_v25, %v619_v30  ;;  %vm623_vm13 = vcmp.ge.f32.partialorder %v614_v26, %v619_v30 }
 0xf2a   :  { %v624_v31 = vsel %vm620_vm10, -inf, %v611_v23  ;;  %v625_v32 = vsel %vm621_vm11, -inf, %v612_v24  ;;  %v626_v33 = vsel %vm622_vm12, -inf, %v613_v25  ;;  %v627_v34 = vsel %vm623_vm13, -inf, %v614_v26 }
 0xf2b   :  { %v628_v3 = vmax.f32 %v624_v31, %v625_v32  ;;  %v629_v35 = vmax.f32 %v626_v33, %v627_v34 }
 0xf2d   :  { %v630_v36 = vmax.f32 %v628_v3, %v629_v35  ;;  %v792_v3 = vld [vmem:[#allocation8 + $0x178] sm:$0xff]  ;;  %v775_v35 = vld [vmem:[#allocation8 + $0xf0] sm:$0xff] }
 0xf2f   :  { %631 = vmax.xlane.f32.xlu1 %v630_v36  ;;  %v807_v36 = vld [vmem:[#allocation8 + $0x1f0] sm:$0xff] }
 0xfb8   :  { %v632_v37 = vpop.xlane.xlu1 %631 }
 0xfb9   :  { %vm633_vm14 = vcmp.ge.f32.partialorder %v624_v31, %v632_v37  ;;  %vm634_vm15 = vcmp.ge.f32.partialorder %v625_v32, %v632_v37  ;;  %vm635_vm0 = vcmp.ge.f32.partialorder %v626_v33, %v632_v37  ;;  %vm636_vm1 = vcmp.ge.f32.partialorder %v627_v34, %v632_v37  ;;  %v759_v37 = vld [vmem:[#allocation8 + $0x70] sm:$0xff] }
 0xfba   :  { %v637_v38 = vsel %vm633_vm14, -inf, %v624_v31  ;;  %v638_v39 = vsel %vm634_vm15, -inf, %v625_v32  ;;  %v639_v40 = vsel %vm635_vm0, -inf, %v626_v33  ;;  %v640_v41 = vsel %vm636_vm1, -inf, %v627_v34  ;;  %v776_v32 = vld [vmem:[#allocation8 + $0xf8] sm:$0xff] }
 0xfbb   :  { %v641_v42 = vmax.f32 %v637_v38, %v638_v39  ;;  %v642_v43 = vmax.f32 %v639_v40, %v640_v41  ;;  %v808_v33 = vld [vmem:[#allocation8 + $0x1f8] sm:$0xff]  ;;  %987 = vmatprep.subr.mxu0 %v776_v32  ;;  %v746_v32 = vld [vmem:[#allocation8 + $0x8] sm:$0xff] }
 0xfbc   :  { %v760_v34 = vld [vmem:[#allocation8 + $0x78] sm:$0xff]  ;;  %1022 = vmatprep.subr.mxu1 %v808_v33  ;;  %v778_v33 = vld [vmem:[#allocation8 + $0x108] sm:$0xff] }
 0xfbd   :  { %v643_v44 = vmax.f32 %v641_v42, %v642_v43  ;;  %988 = vmatpush3.msra.mxu0 %v760_v34  ;;  %1023 = vmatpush3.msra.mxu1 %v792_v3  ;;  %v790_v42 = vld [vmem:[#allocation8 + $0x168] sm:$0xff]  ;;  %v773_v43 = vld [vmem:[#allocation8 + $0xe0] sm:$0xff] }
 0xfbe   :  { %989 = vmatprep.subr.mxu0 %v775_v35  ;;  %1024 = vmatprep.subr.mxu1 %v807_v36 }
 0xfbf   :  { %644 = vmax.xlane.f32.xlu0 %v643_v44  ;;  %990 = vmatpush3.msra.mxu0 %v759_v37  ;;  %v805_v44 = vld [vmem:[#allocation8 + $0x1e0] sm:$0xff] }
0x1048   :  { %v645_v45 = vpop.xlane.xlu0 %644 }
0x1049   :  { %vm646_vm2 = vcmp.ge.f32.partialorder %v637_v38, %v645_v45  ;;  %vm647_vm3 = vcmp.ge.f32.partialorder %v638_v39, %v645_v45  ;;  %vm648_vm4 = vcmp.ge.f32.partialorder %v639_v40, %v645_v45  ;;  %vm649_vm5 = vcmp.ge.f32.partialorder %v640_v41, %v645_v45  ;;  %v757_v45 = vld [vmem:[#allocation8 + $0x60] sm:$0xff] }
0x104a   :  { %v650_v46 = vsel %vm646_vm2, -inf, %v637_v38  ;;  %v651_v47 = vsel %vm647_vm3, -inf, %v638_v39  ;;  %v652_v48 = vsel %vm648_vm4, -inf, %v639_v40  ;;  %v653_v49 = vsel %vm649_vm5, -inf, %v640_v41  ;;  %v791_v38 = vld [vmem:[#allocation8 + $0x170] sm:$0xff]  ;;  %v774_v39 = vld [vmem:[#allocation8 + $0xe8] sm:$0xff] }
0x104b   :  { %v654_v50 = vmax.f32 %v650_v46, %v651_v47  ;;  %v655_v51 = vmax.f32 %v652_v48, %v653_v49  ;;  %v806_v40 = vld [vmem:[#allocation8 + $0x1e8] sm:$0xff]  ;;  %1025 = vmatpush3.msra.mxu1 %v791_v38  ;;  %991 = vmatprep.subr.mxu0 %v774_v39 }
0x104c   :  { %v758_v41 = vld [vmem:[#allocation8 + $0x68] sm:$0xff]  ;;  %1026 = vmatprep.subr.mxu1 %v806_v40 }
0x104d   :  { %v656_v52 = vmax.f32 %v654_v50, %v655_v51  ;;  %992 = vmatpush3.msra.mxu0 %v758_v41  ;;  %1027 = vmatpush3.msra.mxu1 %v790_v42  ;;  %v788_v50 = vld [vmem:[#allocation8 + $0x158] sm:$0xff]  ;;  %v771_v51 = vld [vmem:[#allocation8 + $0xd0] sm:$0xff]  ;;  %v761_v41 = vld [vmem:[#allocation8 + $0x80] sm:$0xff] }
0x104e   :  { %993 = vmatprep.subr.mxu0 %v773_v43  ;;  %1028 = vmatprep.subr.mxu1 %v805_v44  ;;  %v793_v42 = vld [vmem:[#allocation8 + $0x180] sm:$0xff] }
0x104f   :  { %657 = vmax.xlane.f32.xlu1 %v656_v52  ;;  %994 = vmatpush3.msra.mxu0 %v757_v45  ;;  %v803_v52 = vld [vmem:[#allocation8 + $0x1d0] sm:$0xff]  ;;  %v745_v43 = vld [vmem:[#allocation8] sm:$0xff] }
0x1050   :  { %v777_v44 = vld [vmem:[#allocation8 + $0x100] sm:$0xff] }
0x10d8   :  { %v658_v53 = vpop.xlane.xlu1 %657 }
0x10d9   :  { %vm659_vm6 = vcmp.ge.f32.partialorder %v650_v46, %v658_v53  ;;  %vm660_vm7 = vcmp.ge.f32.partialorder %v651_v47, %v658_v53  ;;  %vm661_vm8 = vcmp.ge.f32.partialorder %v652_v48, %v658_v53  ;;  %vm662_vm9 = vcmp.ge.f32.partialorder %v653_v49, %v658_v53  ;;  %v755_v53 = vld [vmem:[#allocation8 + $0x50] sm:$0xff] }
0x10da   :  { %v663_v54 = vsel %vm659_vm6, -inf, %v650_v46  ;;  %v664_v55 = vsel %vm660_vm7, -inf, %v651_v47  ;;  %v665_v56 = vsel %vm661_vm8, -inf, %v652_v48  ;;  %v666_v57 = vsel %vm662_vm9, -inf, %v653_v49  ;;  %v789_v46 = vld [vmem:[#allocation8 + $0x160] sm:$0xff]  ;;  %v772_v47 = vld [vmem:[#allocation8 + $0xd8] sm:$0xff] }
0x10db   :  { %v667_v58 = vmax.f32 %v663_v54, %v664_v55  ;;  %v668_v59 = vmax.f32 %v665_v56, %v666_v57  ;;  %v804_v48 = vld [vmem:[#allocation8 + $0x1d8] sm:$0xff]  ;;  %1029 = vmatpush3.msra.mxu1 %v789_v46  ;;  %995 = vmatprep.subr.mxu0 %v772_v47 }
0x10dc   :  { %v756_v49 = vld [vmem:[#allocation8 + $0x58] sm:$0xff]  ;;  %1030 = vmatprep.subr.mxu1 %v804_v48 }
0x10dd   :  { %v669_v60 = vmax.f32 %v667_v58, %v668_v59  ;;  %996 = vmatpush3.msra.mxu0 %v756_v49  ;;  %1031 = vmatpush3.msra.mxu1 %v788_v50  ;;  %v786_v58 = vld [vmem:[#allocation8 + $0x148] sm:$0xff]  ;;  %v769_v59 = vld [vmem:[#allocation8 + $0xc0] sm:$0xff] }
0x10de   :  { %997 = vmatprep.subr.mxu0 %v771_v51  ;;  %1032 = vmatprep.subr.mxu1 %v803_v52 }
0x10df   :  { %670 = vmax.xlane.f32.xlu0 %v669_v60  ;;  %998 = vmatpush3.msra.mxu0 %v755_v53  ;;  %v801_v60 = vld [vmem:[#allocation8 + $0x1c0] sm:$0xff] }
0x1168   :  { %v671_v61 = vpop.xlane.xlu0 %670 }
0x1169   :  { %vm672_vm10 = vcmp.ge.f32.partialorder %v663_v54, %v671_v61  ;;  %vm673_vm11 = vcmp.ge.f32.partialorder %v664_v55, %v671_v61  ;;  %vm674_vm12 = vcmp.ge.f32.partialorder %v665_v56, %v671_v61  ;;  %vm675_vm13 = vcmp.ge.f32.partialorder %v666_v57, %v671_v61  ;;  %v753_v61 = vld [vmem:[#allocation8 + $0x40] sm:$0xff] }
0x116a   :  { %v676_v62 = vsel %vm672_vm10, -inf, %v663_v54  ;;  %v677_v63 = vsel %vm673_vm11, -inf, %v664_v55  ;;  %v678_v0 = vsel %vm674_vm12, -inf, %v665_v56  ;;  %v679_v1 = vsel %vm675_vm13, -inf, %v666_v57  ;;  %v787_v54 = vld [vmem:[#allocation8 + $0x150] sm:$0xff]  ;;  %v770_v55 = vld [vmem:[#allocation8 + $0xc8] sm:$0xff] }
0x116b   :  { %v680_v4 = vmax.f32 %v676_v62, %v677_v63  ;;  %v681_v5 = vmax.f32 %v678_v0, %v679_v1  ;;  %v802_v56 = vld [vmem:[#allocation8 + $0x1c8] sm:$0xff]  ;;  %1033 = vmatpush3.msra.mxu1 %v787_v54  ;;  %999 = vmatprep.subr.mxu0 %v770_v55 }
0x116c   :  { %v754_v57 = vld [vmem:[#allocation8 + $0x48] sm:$0xff]  ;;  %1034 = vmatprep.subr.mxu1 %v802_v56 }
0x116d   :  { %v682_v6 = vmax.f32 %v680_v4, %v681_v5  ;;  %1000 = vmatpush3.msra.mxu0 %v754_v57  ;;  %1035 = vmatpush3.msra.mxu1 %v786_v58  ;;  %v784_v4 = vld [vmem:[#allocation8 + $0x138] sm:$0xff]  ;;  %v767_v5 = vld [vmem:[#allocation8 + $0xb0] sm:$0xff] }
0x116e   :  { %1001 = vmatprep.subr.mxu0 %v769_v59  ;;  %1036 = vmatprep.subr.mxu1 %v801_v60 }
0x116f   :  { %683 = vmax.xlane.f32.xlu1 %v682_v6  ;;  %1002 = vmatpush3.msra.mxu0 %v753_v61  ;;  %v799_v6 = vld [vmem:[#allocation8 + $0x1b0] sm:$0xff] }
0x11f8   :  { %v684_v7 = vpop.xlane.xlu1 %683 }
0x11f9   :  { %vm685_vm14 = vcmp.ge.f32.partialorder %v676_v62, %v684_v7  ;;  %vm686_vm15 = vcmp.ge.f32.partialorder %v677_v63, %v684_v7  ;;  %vm687_vm0 = vcmp.ge.f32.partialorder %v678_v0, %v684_v7  ;;  %vm688_vm1 = vcmp.ge.f32.partialorder %v679_v1, %v684_v7  ;;  %v751_v7 = vld [vmem:[#allocation8 + $0x30] sm:$0xff] }
0x11fa   :  { %v689_v8 = vsel %vm685_vm14, -inf, %v676_v62  ;;  %v690_v9 = vsel %vm686_vm15, -inf, %v677_v63  ;;  %v691_v10 = vsel %vm687_vm0, -inf, %v678_v0  ;;  %v692_v11 = vsel %vm688_vm1, -inf, %v679_v1  ;;  %v785_v62 = vld [vmem:[#allocation8 + $0x140] sm:$0xff]  ;;  %v768_v63 = vld [vmem:[#allocation8 + $0xb8] sm:$0xff] }
0x11fb   :  { %v693_v12 = vmax.f32 %v689_v8, %v690_v9  ;;  %v694_v13 = vmax.f32 %v691_v10, %v692_v11  ;;  %v800_v0 = vld [vmem:[#allocation8 + $0x1b8] sm:$0xff]  ;;  %1037 = vmatpush3.msra.mxu1 %v785_v62  ;;  %1003 = vmatprep.subr.mxu0 %v768_v63 }
0x11fc   :  { %v752_v1 = vld [vmem:[#allocation8 + $0x38] sm:$0xff]  ;;  %1038 = vmatprep.subr.mxu1 %v800_v0 }
0x11fd   :  { %v695_v15 = vmax.f32 %v693_v12, %v694_v13  ;;  %1004 = vmatpush3.msra.mxu0 %v752_v1  ;;  %1039 = vmatpush3.msra.mxu1 %v784_v4  ;;  %v782_v12 = vld [vmem:[#allocation8 + $0x128] sm:$0xff]  ;;  %v765_v13 = vld [vmem:[#allocation8 + $0xa0] sm:$0xff] }
0x11fe   :  { %1005 = vmatprep.subr.mxu0 %v767_v5  ;;  %1040 = vmatprep.subr.mxu1 %v799_v6 }
0x11ff   :  { %696 = vmax.xlane.f32.xlu0 %v695_v15  ;;  %1006 = vmatpush3.msra.mxu0 %v751_v7  ;;  %v797_v15 = vld [vmem:[#allocation8 + $0x1a0] sm:$0xff] }
0x1288   :  { %v697_v16 = vpop.xlane.xlu0 %696 }
0x1289   :  { %vm698_vm2 = vcmp.ge.f32.partialorder %v689_v8, %v697_v16  ;;  %vm699_vm3 = vcmp.ge.f32.partialorder %v690_v9, %v697_v16  ;;  %vm700_vm4 = vcmp.ge.f32.partialorder %v691_v10, %v697_v16  ;;  %vm701_vm5 = vcmp.ge.f32.partialorder %v692_v11, %v697_v16  ;;  %v749_v16 = vld [vmem:[#allocation8 + $0x20] sm:$0xff] }
0x128a   :  { %v702_v17 = vsel %vm698_vm2, -inf, %v689_v8  ;;  %v703_v18 = vsel %vm699_vm3, -inf, %v690_v9  ;;  %v704_v19 = vsel %vm700_vm4, -inf, %v691_v10  ;;  %v705_v20 = vsel %vm701_vm5, -inf, %v692_v11  ;;  %v783_v8 = vld [vmem:[#allocation8 + $0x130] sm:$0xff]  ;;  %v766_v9 = vld [vmem:[#allocation8 + $0xa8] sm:$0xff] }
0x128b   :  { %v706_v21 = vmax.f32 %v702_v17, %v703_v18  ;;  %v707_v22 = vmax.f32 %v704_v19, %v705_v20  ;;  %v798_v10 = vld [vmem:[#allocation8 + $0x1a8] sm:$0xff]  ;;  %1041 = vmatpush3.msra.mxu1 %v783_v8  ;;  %1007 = vmatprep.subr.mxu0 %v766_v9 }
0x128c   :  { %v750_v11 = vld [vmem:[#allocation8 + $0x28] sm:$0xff]  ;;  %1042 = vmatprep.subr.mxu1 %v798_v10 }
0x128d   :  { %v708_v23 = vmax.f32 %v706_v21, %v707_v22  ;;  %1008 = vmatpush3.msra.mxu0 %v750_v11  ;;  %1043 = vmatpush3.msra.mxu1 %v782_v12  ;;  %v780_v21 = vld [vmem:[#allocation8 + $0x118] sm:$0xff]  ;;  %v763_v22 = vld [vmem:[#allocation8 + $0x90] sm:$0xff] }
0x128e   :  { %1009 = vmatprep.subr.mxu0 %v765_v13  ;;  %1044 = vmatprep.subr.mxu1 %v797_v15 }
0x128f   :  { %709 = vmax.xlane.f32.xlu1 %v708_v23  ;;  %1010 = vmatpush3.msra.mxu0 %v749_v16  ;;  %v795_v23 = vld [vmem:[#allocation8 + $0x190] sm:$0xff] }
0x1318   :  { %v710_v24 = vpop.xlane.xlu1 %709 }
0x1319   :  { %vm711_vm6 = vcmp.ge.f32.partialorder %v702_v17, %v710_v24  ;;  %vm712_vm7 = vcmp.ge.f32.partialorder %v703_v18, %v710_v24  ;;  %vm713_vm8 = vcmp.ge.f32.partialorder %v704_v19, %v710_v24  ;;  %vm714_vm9 = vcmp.ge.f32.partialorder %v705_v20, %v710_v24  ;;  %v747_v24 = vld [vmem:[#allocation8 + $0x10] sm:$0xff] }
0x131a   :  { %v1270_v25 = vsel %vm711_vm6, -inf, %v702_v17  ;;  %v1272_v26 = vsel %vm712_vm7, -inf, %v703_v18  ;;  %v1274_v27 = vsel %vm713_vm8, -inf, %v704_v19  ;;  %v1276_v28 = vsel %vm714_vm9, -inf, %v705_v20  ;;  %v781_v17 = vld [vmem:[#allocation8 + $0x120] sm:$0xff]  ;;  %v764_v18 = vld [vmem:[#allocation8 + $0x98] sm:$0xff] }
0x131b   :  { %v719_v29 = vmax.f32 %v1270_v25, %v1272_v26  ;;  %v720_v30 = vmax.f32 %v1274_v27, %v1276_v28  ;;  %v796_v19 = vld [vmem:[#allocation8 + $0x198] sm:$0xff]  ;;  %1045 = vmatpush3.msra.mxu1 %v781_v17  ;;  %1011 = vmatprep.subr.mxu0 %v764_v18 }
0x131c   :  { %v748_v20 = vld [vmem:[#allocation8 + $0x18] sm:$0xff]  ;;  %1046 = vmatprep.subr.mxu1 %v796_v19 }
0x131d   :  { %v721_v31 = vmax.f32 %v719_v29, %v720_v30  ;;  %v779_v29 = vld [vmem:[#allocation8 + $0x110] sm:$0xff]  ;;  %1012 = vmatpush3.msra.mxu0 %v748_v20  ;;  %1047 = vmatpush3.msra.mxu1 %v780_v21  ;;  %v762_v30 = vld [vmem:[#allocation8 + $0x88] sm:$0xff] }
0x131e   :  { %1013 = vmatprep.subr.mxu0 %v763_v22  ;;  %1048 = vmatprep.subr.mxu1 %v795_v23 }
0x131f   :  { %722 = vmax.xlane.f32.xlu0 %v721_v31  ;;  %v794_v31 = vld [vmem:[#allocation8 + $0x188] sm:$0xff]  ;;  %1014 = vmatpush3.msra.mxu0 %v747_v24 }
0x1320   :  { %1049 = vmatpush3.msra.mxu1 %v779_v29  ;;  %1015 = vmatprep.subr.mxu0 %v762_v30 }
0x1321   :  { %1050 = vmatprep.subr.mxu1 %v794_v31  ;;  %1016 = vmatpush3.msra.mxu0 %v746_v32 }
0x1322   :  { %1051 = vmatpush3.msra.mxu1 %v778_v33  ;;  %1017 = vmatprep.subr.mxu0 %v761_v41 }
0x1323   :  { %1052 = vmatprep.subr.mxu1 %v793_v42  ;;  %1018 = vmatpush3.msra.mxu0 %v745_v43 }
0x1324   :  { %1053 = vmatpush3.msra.mxu1 %v777_v44 }
0x13a8   :  { %v723_v34 = vpop.xlane.xlu0 %722 }
0x13a9   :  { %vm724_vm10 = vcmp.ge.f32.partialorder %v1270_v25, %v723_v34  ;;  %vm725_vm11 = vcmp.ge.f32.partialorder %v1272_v26, %v723_v34  ;;  %vm726_vm12 = vcmp.ge.f32.partialorder %v1274_v27, %v723_v34  ;;  %vm727_vm13 = vcmp.ge.f32.partialorder %v1276_v28, %v723_v34 }
0x13aa   :  { %v728_v3 = vsel %vm724_vm10, -inf, %v1270_v25  ;;  %v729_v35 = vsel %vm725_vm11, -inf, %v1272_v26  ;;  %v730_v36 = vsel %vm726_vm12, -inf, %v1274_v27  ;;  %v731_v37 = vsel %vm727_vm13, -inf, %v1276_v28  ;;  %v1072_v25 = vld [vmem:[#allocation11] sm:$0xff]  ;;  %v1073_v26 = vld [vmem:[#allocation11 + $0x10] sm:$0xff] }
0x13ab   :  { %v732_v38 = vmax.f32 %v728_v3, %v729_v35  ;;  %v733_v39 = vmax.f32 %v730_v36, %v731_v37  ;;  %v1074_v27 = vld [vmem:[#allocation11 + $0x8] sm:$0xff]  ;;  %v1075_v28 = vld [vmem:[#allocation11 + $0x18] sm:$0xff] }
0x13ad   :  { %v734_v40 = vmax.f32 %v732_v38, %v733_v39 }
0x13af   :  { %735 = vmax.xlane.f32.xlu1 %v734_v40 }
0x1438   :  { %v736_v45 = vpop.xlane.xlu1 %735 }
0x1439   :  { %vm737_vm14 = vcmp.ge.f32.partialorder %v1072_v25, %v736_v45  ;;  %vm739_vm15 = vcmp.ge.f32.partialorder %v1073_v26, %v736_v45  ;;  %vm738_vm0 = vcmp.ge.f32.partialorder %v1074_v27, %v736_v45  ;;  %vm740_vm1 = vcmp.ge.f32.partialorder %v1075_v28, %v736_v45 }
0x143a   :  { %983 = vmatprep.mubr.msk.f32.mxu0 %vm738_vm0, %v1074_v27  ;;  %985 = vmatprep.mubr.msk.f32.mxu1 %vm740_vm1, %v1075_v28 }
0x143b   :  { %984 = vmatmul.mubr.msk.f32.vlgmr.msra.gmra.mxu0 %vm737_vm14, %v1072_v25  ;;  %986 = vmatmul.mubr.msk.f32.vlgmr.msra.gmra.mxu1 %vm739_vm15, %v1073_v26 }
0x143c   :  { %1167 = shalt.err (!%p1164_p10)
}
0x143d   :  { %971 = dma.vmem_to_hbm [thread:$0]  %s969_s3, 512, %s1303_s5, [#allocation12]  }
0x143e   :  { %s1216_s18 = smov [#allocation10]  }
0x143f   :  { %s958_s19 = sshll.u32 %s1216_s18, 4  ;;  %s959_s19 = int_to_ptr.vmem [resolvable:$true] %s958_s19 }
0x1440   :  { %s1176_s20 = scalar_lea.vmem %s959_s19, 128  ;;  %p1181_p12 = scmp.lt.s32.totalorder %s959_s19, %s959_s19 }
0x1441   :  { %p1177_p11 = scmp.ne.s32.totalorder %s959_s19, %s1176_s20  ;;  %p1182_p13 = scmp.lt.s32.totalorder %s1176_s20, %s1176_s20 }
0x1443   :  { %p1183_p0 = por %p1182_p13, %p1181_p12 }
0x1445   :  { %p1184_p1 = pnand %p1183_p0, %p1177_p11 }
0x14fb   :  { %v1019_v46 = vpop.f32.mrf.mxu0  ;;  %v1054_v47 = vpop.f32.mrf.mxu1 }
0x14fd   :  { %v1020_v48 = vpop.f32.mrf.mxu0  ;;  %v1055_v49 = vpop.f32.mrf.mxu1 }
0x14fe   :  { %v1021_v50 = vadd.f32 %v1020_v48, %v1019_v46  ;;  %v1056_v51 = vadd.f32 %v1055_v49, %v1054_v47 }
0x1500   :  { %v946_v52 = vadd.f32 %v1056_v51, %v1021_v50 }
0x1502   :  { %v949_v53 = vmul.f32 %v946_v52, %v1266_v14 }
0x1504   :  { %v950_v54 = vadd.f32 %v949_v53, %v1259_v2 }
0x1506   :  { %951 = vst [vmem:[#allocation10] sm:$0xff] %v950_v54 }
0x1507   :  { %1187 = shalt.err (!%p1184_p1)
}
0x1508   :  { %961 = dma.vmem_to_hbm [thread:$0]  %s959_s19, 128, %s1302_s4, [#allocation4]  }
0x1509   :  { %1202 = dma.done.wait [#allocation4], 128  }
0x150a   :  { %1203 = vsyncadd [#allocation4], 4294967168 }
0x150b   :  { %1204 = dma.done.wait [#allocation12], 512  }
0x150c   :  { %1205 = vsyncadd [#allocation12], 4294966784 }
0x150d   :  { %978 = vsyncpa [#allocation3], 1 }
0x150e   :  { %979 = vsyncpa [#allocation6], 1 }
0x150f   :  { %980 = vsyncpa [#allocation9], 1 }
0x1510   :  { %981 = vsyncpa [#allocation4], 1 }
0x1511   :  { %982 = vsyncpa [#allocation12], 1 }

</bundles_post_ra>
